<compile_context>
chip_gen: v5e
topology: v5e:2x2
jax: 0.10.0
libtpu: 0.0.40
codegen_flags: <defaults>
</compile_context>

<pallas_src>
import jax
import jax.numpy as jnp
from jax import lax
from jax.experimental import pallas as pl
from jax.experimental.pallas import tpu as pltpu

KSIZE = 7
PAD = KSIZE // 2
KK = KSIZE * KSIZE


# ------------------------------ fused kernel --------------------------------
def _make_kernel(W, HW, pad_off, lp, lane_chunk):
    n_full = HW // lane_chunk
    rem = HW - n_full * lane_chunk

    def kernel(x_ref, w_ref, out_ref, sum_ref, max_ref, pad_ref):
        c_idx = pl.program_id(1)
        n_c = pl.num_programs(1)

        @pl.when(c_idx == 0)
        def _init():
            sum_ref[...] = jnp.zeros(sum_ref.shape, sum_ref.dtype)
            max_ref[...] = jnp.full(max_ref.shape, -jnp.inf, max_ref.dtype)

        # Channel-block reduction: native-dtype load, in-VMEM upcast, f32 accum.
        xs = x_ref[0].astype(jnp.float32)                        # (c_blk, HW) lane-dense
        sum_ref[...] += jnp.sum(xs, axis=0, keepdims=True)
        max_ref[...] = jnp.maximum(max_ref[...],
                                   jnp.max(xs, axis=0, keepdims=True))

        @pl.when(c_idx == n_c - 1)
        def _finalize():
            # Zero only the two halo strips; the middle is overwritten below.
            zeros_halo = jnp.zeros((2, pad_off), jnp.float32)
            pad_ref[:, 0:pad_off] = zeros_halo
            pad_ref[:, pad_off + HW:lp] = zeros_halo
            # Row 0 carries the channel SUM (1/C is folded into the weights),
            # row 1 the channel max.
            pad_ref[0:1, pad_off:pad_off + HW] = sum_ref[...]
            pad_ref[1:2, pad_off:pad_off + HW] = max_ref[...]

            def conv_chunk(cs, cw):
                # cs: lane offset of this output chunk (may be traced); cw static.
                wmat = w_ref[...]                                 # (2, 49) f32
                col = (lax.broadcasted_iota(jnp.int32, (1, cw), 1) + cs) % W
                acc0 = jnp.zeros((2, cw), jnp.float32)
                acc1 = jnp.zeros((2, cw), jnp.float32)
                for kx in range(KSIZE):
                    dx = kx - PAD
                    # per-kx column-validity mask kills horizontal wrap-around
                    mask = ((col >= -dx) & (col < W - dx)).astype(jnp.float32)
                    part = jnp.zeros((2, cw), jnp.float32)
                    for ky in range(KSIZE):
                        t = ky * KSIZE + kx
                        start = cs + (pad_off + (ky - PAD) * W + dx)
                        tap = pad_ref[:, pl.ds(start, cw)]        # (2, cw): both rows
                        part = part + wmat[:, t:t + 1] * tap
                    if kx % 2 == 0:
                        acc0 = acc0 + part * mask
                    else:
                        acc1 = acc1 + part * mask
                acc = acc0 + acc1                                 # (2, cw)
                res = jax.nn.sigmoid(acc[0:1, :] + acc[1:2, :])   # (1, cw)
                out_ref[:, :, pl.ds(cs, cw)] = (
                    res.reshape(1, 1, cw).astype(out_ref.dtype))

            if n_full > 0:
                @pl.loop(0, n_full)
                def _(j):
                    conv_chunk(pl.multiple_of(j * lane_chunk, 128), lane_chunk)
            if rem > 0:
                conv_chunk(n_full * lane_chunk, rem)

    return kernel


# -------------------------------- wrapper ------------------------------------
def _pick_c_block(C, HW, bytes_per_channel_row, fixed_bytes, budget_bytes):
    """Largest divisor of C (multiple of 8, or C itself) fitting the budget."""
    cands = [d for d in range(1, C + 1)
             if C % d == 0 and (d == C or d % 8 == 0)]
    cands.sort(reverse=True)
    for d in cands:
        if d * HW * bytes_per_channel_row + fixed_bytes <= budget_bytes:
            return d
    return cands[-1]


def spatial_attention_pallas(x, conv_w, *, c_block=None, lane_chunk=1024,
                             vmem_budget_bytes=40 * 1024 * 1024):
    """sigmoid(conv7x7(cat([mean_c(x), max_c(x)], dim=1))).  x: (B, C, H, W)."""
    B, C, H, W = x.shape
    assert conv_w.shape == (1, 2, KSIZE, KSIZE)
    HW = H * W

    # Flat zero padding: >= PAD*W + PAD zeros each side, left offset rounded
    # up to 128 so the stats store is lane-aligned.
    pad_off = max(PAD * W + PAD, 128)
    pad_off = ((pad_off + 127) // 128) * 128
    lp = 2 * pad_off + HW

    # x stays in its NATIVE dtype (no wrapper cast); lane-dense view is free.
    x2 = x.reshape(B, C, HW)
    elem = x2.dtype.itemsize

    # Conv weights as (in_ch, kh*kw) f32 with 1/C folded into the mean row.
    w2 = conv_w.reshape(2, KK).astype(jnp.float32)
    w2 = w2 * jnp.array([[1.0 / C], [1.0]], jnp.float32)

    # Triple-buffer the x stream if this JAX supports pipeline_mode=Buffered.
    try:
        _pipe = pl.Buffered(3)
        pl.BlockSpec((8, 128), lambda i, j: (0, 0), pipeline_mode=_pipe)
        x_pipe, n_x_buf = _pipe, 3
    except Exception:  # pragma: no cover - older JAX
        x_pipe, n_x_buf = None, 2

    # VMEM budget: x buffers + in-kernel f32 upcast temp (when x is not f32)
    # + pad/stat scratch + double-buffered output tile + weights.
    out_elem = x.dtype.itemsize
    fixed = (2 * lp * 4            # pad scratch
             + 2 * HW * 4          # sum + max scratch (f32)
             + 2 * HW * out_elem   # double-buffered output tile
             + 2 * 2 * KK * 4)     # weights (double-buffered)
    bytes_per_row = n_x_buf * elem + (4 if elem != 4 else 0)
    if c_block is None:
        c_block = _pick_c_block(C, HW, bytes_per_row, fixed, vmem_budget_bytes)
    assert C % c_block == 0 and (c_block == C or c_block % 8 == 0), \
        "c_block must divide C and be a multiple of 8 (or equal C)"
    n_cblk = C // c_block

    need = c_block * HW * bytes_per_row + fixed
    vmem_limit = int(max(48 * 1024 * 1024, need + (8 << 20)))  # v7x-safe normally

    kernel = _make_kernel(W, HW, pad_off, lp, lane_chunk)

    def build_call(pipe):
        if pipe is None:
            x_spec = pl.BlockSpec((1, c_block, HW), lambda b, c: (b, c, 0))
        else:
            x_spec = pl.BlockSpec((1, c_block, HW), lambda b, c: (b, c, 0),
                                  pipeline_mode=pipe)
        return pl.pallas_call(
            kernel,
            out_shape=jax.ShapeDtypeStruct((B, 1, HW), x.dtype),
            grid=(B, n_cblk),
            in_specs=[x_spec,
                      pl.BlockSpec((2, KK), lambda b, c: (0, 0))],
            out_specs=pl.BlockSpec((1, 1, HW), lambda b, c: (b, 0, 0)),
            scratch_shapes=[
                pltpu.VMEM((1, HW), jnp.float32),   # running channel sum (f32)
                pltpu.VMEM((1, HW), jnp.float32),   # running channel max (f32)
                pltpu.VMEM((2, lp), jnp.float32),   # zero-padded flat conv input
            ],
            compiler_params=pltpu.CompilerParams(
                dimension_semantics=("parallel", "arbitrary"),
                vmem_limit_bytes=vmem_limit),
        )

    # TODO(synk): on v7x with B == 1 the "parallel" batch axis feeds only one
    # TensorCore; split the channel reduction across the two cores (outer
    # parallel factor of 2 + small partial-stat combine) to use both.
    if x_pipe is not None:
        try:
            out2 = build_call(x_pipe)(x2, w2)
        except Exception:  # Buffered(3) not lowerable on this runtime
            out2 = build_call(None)(x2, w2)
    else:
        out2 = build_call(None)(x2, w2)

    return out2.reshape(B, 1, H, W)


# --------------------- pure-JAX reference (verification) --------------------
def spatial_attention_ref(x, conv_w):
    xf = x.astype(jnp.float32)
    avg = jnp.mean(xf, axis=1, keepdims=True)
    mx = jnp.max(xf, axis=1, keepdims=True)
    stats = jnp.concatenate([avg, mx], axis=1)
    conv = lax.conv_general_dilated(
        stats, conv_w.astype(jnp.float32), (1, 1), ((PAD, PAD), (PAD, PAD)),
        dimension_numbers=("NCHW", "OIHW", "NCHW"))
    return jax.nn.sigmoid(conv).astype(x.dtype)


if __name__ == "__main__":
    key = jax.random.PRNGKey(0)
    kx_key, kw_key, kx2_key = jax.random.split(key, 3)

    conv_w = jax.random.normal(kw_key, (1, 2, KSIZE, KSIZE), jnp.float32) * 0.1

    # Config 1: exercises the multi-block channel reduction (c_block=16 -> 2
    # channel blocks) and the static remainder path of the chunked conv.
    B, C, H, W = 2, 32, 16, 16
    x = jax.random.normal(kx_key, (B, C, H, W), jnp.float32)
    out = jax.block_until_ready(spatial_attention_pallas(x, conv_w, c_block=16))
    ref = spatial_attention_ref(x, conv_w)
    err1 = float(jnp.max(jnp.abs(out - ref)))
    assert err1 < 1e-4, f"config1 max abs err vs reference: {err1}"

    # Config 2: exercises the pl.loop full-chunk path + remainder chunk of the
    # lane-chunked conv epilogue (HW=240, lane_chunk=128) and auto c_block.
    B2, C2, H2, W2 = 2, 8, 12, 20
    x_b = jax.random.normal(kx2_key, (B2, C2, H2, W2), jnp.float32)
    out2 = jax.block_until_ready(
        spatial_attention_pallas(x_b, conv_w, lane_chunk=128))
    ref2 = spatial_attention_ref(x_b, conv_w)
    err2 = float(jnp.max(jnp.abs(out2 - ref2)))
    assert err2 < 1e-4, f"config2 max abs err vs reference: {err2}"

    print("KERNEL_OK")
</pallas_src>

<mosaic_0001>
module attributes {stable_mosaic.version = 11 : i64} {
  func.func @kernel(%arg0: i32, %arg1: i32, %arg2: memref<1x16x256xf32, #tpu.memory_space<vmem>>, %arg3: memref<2x49xf32, #tpu.memory_space<vmem>>, %arg4: memref<1x1x256xf32, #tpu.memory_space<vmem>>, %arg5: memref<1x256xf32, #tpu.memory_space<vmem>>, %arg6: memref<1x256xf32, #tpu.memory_space<vmem>>, %arg7: memref<2x512xf32, #tpu.memory_space<vmem>>) attributes {dimension_semantics = [#tpu.dimension_semantics<parallel>, #tpu.dimension_semantics<arbitrary>], iteration_bounds = array<i64: 2, 2>, scalar_prefetch = 0 : i64, scratch_operands = 3 : i64, tpu.core_type = #tpu.core_type<tc>, window_params = [{transform_indices = @transform_0, window_bounds = array<i64: 1, 16, 256>}, {pipeline_mode = #tpu.pipeline_mode<synchronous>, transform_indices = @transform_1, window_bounds = array<i64: 2, 49>}, {transform_indices = @transform_2, window_bounds = array<i64: 1, 1, 256>}]} {
    %c0_i32 = arith.constant 0 : i32
    %0 = arith.cmpi eq, %arg1, %c0_i32 : i32
    %1 = arith.extui %0 : i1 to i32
    %c0_i32_0 = arith.constant 0 : i32
    %2 = arith.cmpi ne, %1, %c0_i32_0 : i32
    scf.if %2 {
      %cst_13 = arith.constant 0.000000e+00 : f32
      %18 = vector.broadcast %cst_13 : f32 to vector<1x256xf32>
      %c0_14 = arith.constant 0 : index
      %c0_15 = arith.constant 0 : index
      %19 = vector.load %arg5[%c0_14, %c0_15] : memref<1x256xf32, #tpu.memory_space<vmem>>, vector<1x256xf32>
      tpu.vector_store %arg5[%c0_14, %c0_15], %18 {strides = array<i32>} : memref<1x256xf32, #tpu.memory_space<vmem>>, vector<1x256xf32>,
      %cst_16 = arith.constant 0xFF800000 : f32
      %20 = vector.broadcast %cst_16 : f32 to vector<1x256xf32>
      %c0_17 = arith.constant 0 : index
      %c0_18 = arith.constant 0 : index
      %21 = vector.load %arg6[%c0_17, %c0_18] : memref<1x256xf32, #tpu.memory_space<vmem>>, vector<1x256xf32>
      tpu.vector_store %arg6[%c0_17, %c0_18], %20 {strides = array<i32>} : memref<1x256xf32, #tpu.memory_space<vmem>>, vector<1x256xf32>,
    } else {
    }
    %c0 = arith.constant 0 : index
    %c0_1 = arith.constant 0 : index
    %c0_2 = arith.constant 0 : index
    %3 = vector.load %arg2[%c0, %c0_1, %c0_2] : memref<1x16x256xf32, #tpu.memory_space<vmem>>, vector<1x16x256xf32>
    %4 = vector.shape_cast %3 : vector<1x16x256xf32> to vector<16x256xf32>
    %c0_3 = arith.constant 0 : index
    %c0_4 = arith.constant 0 : index
    %5 = vector.load %arg5[%c0_3, %c0_4] : memref<1x256xf32, #tpu.memory_space<vmem>>, vector<1x256xf32>
    %cst = arith.constant dense<0.000000e+00> : vector<256xf32>
    %6 = vector.multi_reduction <add>, %4, %cst [0] : vector<16x256xf32> to vector<256xf32>
    %7 = vector.shape_cast %6 : vector<256xf32> to vector<1x256xf32>
    %8 = arith.addf %5, %7 : vector<1x256xf32>
    %c0_5 = arith.constant 0 : index
    %c0_6 = arith.constant 0 : index
    %9 = vector.load %arg5[%c0_5, %c0_6] : memref<1x256xf32, #tpu.memory_space<vmem>>, vector<1x256xf32>
    tpu.vector_store %arg5[%c0_5, %c0_6], %8 {strides = array<i32>} : memref<1x256xf32, #tpu.memory_space<vmem>>, vector<1x256xf32>,
    %c0_7 = arith.constant 0 : index
    %c0_8 = arith.constant 0 : index
    %10 = vector.load %arg6[%c0_7, %c0_8] : memref<1x256xf32, #tpu.memory_space<vmem>>, vector<1x256xf32>
    %cst_9 = arith.constant dense<0xFF800000> : vector<256xf32>
    %11 = vector.multi_reduction <maximumf>, %4, %cst_9 [0] : vector<16x256xf32> to vector<256xf32>
    %12 = vector.shape_cast %11 : vector<256xf32> to vector<1x256xf32>
    %13 = arith.maximumf %10, %12 : vector<1x256xf32>
    %c0_10 = arith.constant 0 : index
    %c0_11 = arith.constant 0 : index
    %14 = vector.load %arg6[%c0_10, %c0_11] : memref<1x256xf32, #tpu.memory_space<vmem>>, vector<1x256xf32>
    tpu.vector_store %arg6[%c0_10, %c0_11], %13 {strides = array<i32>} : memref<1x256xf32, #tpu.memory_space<vmem>>, vector<1x256xf32>,
    %c1_i32 = arith.constant 1 : i32
    %15 = arith.cmpi eq, %arg1, %c1_i32 : i32
    %16 = arith.extui %15 : i1 to i32
    %c0_i32_12 = arith.constant 0 : i32
    %17 = arith.cmpi ne, %16, %c0_i32_12 : i32
    scf.if %17 {
      %cst_13 = arith.constant 0.000000e+00 : f32
      %18 = vector.broadcast %cst_13 : f32 to vector<2x128xf32>
      %c0_14 = arith.constant 0 : index
      %c0_15 = arith.constant 0 : index
      %19 = vector.load %arg7[%c0_14, %c0_15] : memref<2x512xf32, #tpu.memory_space<vmem>>, vector<2x128xf32>
      tpu.vector_store %arg7[%c0_14, %c0_15], %18 {strides = array<i32>} : memref<2x512xf32, #tpu.memory_space<vmem>>, vector<2x128xf32>,
      %c0_16 = arith.constant 0 : index
      %c384 = arith.constant 384 : index
      %20 = vector.load %arg7[%c0_16, %c384] : memref<2x512xf32, #tpu.memory_space<vmem>>, vector<2x128xf32>
      tpu.vector_store %arg7[%c0_16, %c384], %18 {strides = array<i32>} : memref<2x512xf32, #tpu.memory_space<vmem>>, vector<2x128xf32>,
      %c0_17 = arith.constant 0 : index
      %c0_18 = arith.constant 0 : index
      %21 = vector.load %arg5[%c0_17, %c0_18] : memref<1x256xf32, #tpu.memory_space<vmem>>, vector<1x256xf32>
      %c0_19 = arith.constant 0 : index
      %c128 = arith.constant 128 : index
      %22 = vector.load %arg7[%c0_19, %c128] : memref<2x512xf32, #tpu.memory_space<vmem>>, vector<1x256xf32>
      tpu.vector_store %arg7[%c0_19, %c128], %21 {strides = array<i32>} : memref<2x512xf32, #tpu.memory_space<vmem>>, vector<1x256xf32>,
      %c0_20 = arith.constant 0 : index
      %c0_21 = arith.constant 0 : index
      %23 = vector.load %arg6[%c0_20, %c0_21] : memref<1x256xf32, #tpu.memory_space<vmem>>, vector<1x256xf32>
      %c1 = arith.constant 1 : index
      %c128_22 = arith.constant 128 : index
      %24 = vector.load %arg7[%c1, %c128_22] : memref<2x512xf32, #tpu.memory_space<vmem>>, vector<1x256xf32>
      tpu.vector_store %arg7[%c1, %c128_22], %23 {strides = array<i32>} : memref<2x512xf32, #tpu.memory_space<vmem>>, vector<1x256xf32>,
      %c0_23 = arith.constant 0 : index
      %c0_24 = arith.constant 0 : index
      %25 = vector.load %arg3[%c0_23, %c0_24] : memref<2x49xf32, #tpu.memory_space<vmem>>, vector<2x49xf32>
      %26 = tpu.iota {dimensions = array<i32: 1>} : vector<1x256xi32>
      %c0_i32_25 = arith.constant 0 : i32
      %27 = vector.broadcast %c0_i32_25 : i32 to vector<1x256xi32>
      %28 = arith.addi %26, %27 : vector<1x256xi32>
      %c16_i32 = arith.constant 16 : i32
      %c0_i32_26 = arith.constant 0 : i32
      %29 = arith.cmpi eq, %c16_i32, %c0_i32_26 : i32
      %c1_i32_27 = arith.constant 1 : i32
      %30 = arith.select %29, %c1_i32_27, %c16_i32 : i32
      %31 = vector.broadcast %30 : i32 to vector<1x256xi32>
      %32 = arith.remsi %28, %31 : vector<1x256xi32>
      %c0_i32_28 = arith.constant 0 : i32
      %33 = vector.broadcast %c0_i32_28 : i32 to vector<1x256xi32>
      %34 = arith.cmpi ne, %32, %33 : vector<1x256xi32>
      %c0_i32_29 = arith.constant 0 : i32
      %35 = vector.broadcast %c0_i32_29 : i32 to vector<1x256xi32>
      %36 = arith.cmpi slt, %32, %35 : vector<1x256xi32>
      %c0_i32_30 = arith.constant 0 : i32
      %37 = arith.cmpi slt, %30, %c0_i32_30 : i32
      %38 = vector.broadcast %37 : i1 to vector<1x256xi1>
      %39 = vector.broadcast %38 : vector<1x256xi1> to vector<1x256xi1>
      %40 = arith.xori %36, %39 : vector<1x256xi1>
      %41 = arith.andi %40, %34 : vector<1x256xi1>
      %42 = vector.broadcast %30 : i32 to vector<1x256xi32>
      %43 = arith.addi %32, %42 : vector<1x256xi32>
      %44 = arith.select %41, %43, %32 : vector<1x256xi1>, vector<1x256xi32>
      %cst_31 = arith.constant 0.000000e+00 : f32
      %45 = vector.broadcast %cst_31 : f32 to vector<2x256xf32>
      %cst_32 = arith.constant 0.000000e+00 : f32
      %46 = vector.broadcast %cst_32 : f32 to vector<2x256xf32>
      %c3_i32 = arith.constant 3 : i32
      %47 = vector.broadcast %c3_i32 : i32 to vector<1x256xi32>
      %48 = arith.cmpi sge, %44, %47 : vector<1x256xi32>
      %c19_i32 = arith.constant 19 : i32
      %49 = vector.broadcast %c19_i32 : i32 to vector<1x256xi32>
      %50 = arith.cmpi slt, %44, %49 : vector<1x256xi32>
      %51 = arith.andi %48, %50 : vector<1x256xi1>
      %52 = arith.extui %51 : vector<1x256xi1> to vector<1x256xi32>
      %53 = arith.sitofp %52 : vector<1x256xi32> to vector<1x256xf32>
      %cst_33 = arith.constant 0.000000e+00 : f32
      %54 = vector.broadcast %cst_33 : f32 to vector<2x256xf32>
      %c0_34 = arith.constant 0 : index
      %c77 = arith.constant 77 : index
      %55 = vector.load %arg7[%c0_34, %c77] : memref<2x512xf32, #tpu.memory_space<vmem>>, vector<2x256xf32>
      %56 = vector.extract_strided_slice %25 {offsets = [0, 0], sizes = [2, 1], strides = [1, 1]} : vector<2x49xf32> to vector<2x1xf32>
      %57 = vector.broadcast %56 : vector<2x1xf32> to vector<2x256xf32>
      %58 = arith.mulf %57, %55 : vector<2x256xf32>
      %59 = arith.addf %54, %58 : vector<2x256xf32>
      %c0_35 = arith.constant 0 : index
      %c93 = arith.constant 93 : index
      %60 = vector.load %arg7[%c0_35, %c93] : memref<2x512xf32, #tpu.memory_space<vmem>>, vector<2x256xf32>
      %61 = vector.extract_strided_slice %25 {offsets = [0, 7], sizes = [2, 1], strides = [1, 1]} : vector<2x49xf32> to vector<2x1xf32>
      %62 = vector.broadcast %61 : vector<2x1xf32> to vector<2x256xf32>
      %63 = arith.mulf %62, %60 : vector<2x256xf32>
      %64 = arith.addf %59, %63 : vector<2x256xf32>
      %c0_36 = arith.constant 0 : index
      %c109 = arith.constant 109 : index
      %65 = vector.load %arg7[%c0_36, %c109] : memref<2x512xf32, #tpu.memory_space<vmem>>, vector<2x256xf32>
      %66 = vector.extract_strided_slice %25 {offsets = [0, 14], sizes = [2, 1], strides = [1, 1]} : vector<2x49xf32> to vector<2x1xf32>
      %67 = vector.broadcast %66 : vector<2x1xf32> to vector<2x256xf32>
      %68 = arith.mulf %67, %65 : vector<2x256xf32>
      %69 = arith.addf %64, %68 : vector<2x256xf32>
      %c0_37 = arith.constant 0 : index
      %c125 = arith.constant 125 : index
      %70 = vector.load %arg7[%c0_37, %c125] : memref<2x512xf32, #tpu.memory_space<vmem>>, vector<2x256xf32>
      %71 = vector.extract_strided_slice %25 {offsets = [0, 21], sizes = [2, 1], strides = [1, 1]} : vector<2x49xf32> to vector<2x1xf32>
      %72 = vector.broadcast %71 : vector<2x1xf32> to vector<2x256xf32>
      %73 = arith.mulf %72, %70 : vector<2x256xf32>
      %74 = arith.addf %69, %73 : vector<2x256xf32>
      %c0_38 = arith.constant 0 : index
      %c141 = arith.constant 141 : index
      %75 = vector.load %arg7[%c0_38, %c141] : memref<2x512xf32, #tpu.memory_space<vmem>>, vector<2x256xf32>
      %76 = vector.extract_strided_slice %25 {offsets = [0, 28], sizes = [2, 1], strides = [1, 1]} : vector<2x49xf32> to vector<2x1xf32>
      %77 = vector.broadcast %76 : vector<2x1xf32> to vector<2x256xf32>
      %78 = arith.mulf %77, %75 : vector<2x256xf32>
      %79 = arith.addf %74, %78 : vector<2x256xf32>
      %c0_39 = arith.constant 0 : index
      %c157 = arith.constant 157 : index
      %80 = vector.load %arg7[%c0_39, %c157] : memref<2x512xf32, #tpu.memory_space<vmem>>, vector<2x256xf32>
      %81 = vector.extract_strided_slice %25 {offsets = [0, 35], sizes = [2, 1], strides = [1, 1]} : vector<2x49xf32> to vector<2x1xf32>
      %82 = vector.broadcast %81 : vector<2x1xf32> to vector<2x256xf32>
      %83 = arith.mulf %82, %80 : vector<2x256xf32>
      %84 = arith.addf %79, %83 : vector<2x256xf32>
      %c0_40 = arith.constant 0 : index
      %c173 = arith.constant 173 : index
      %85 = vector.load %arg7[%c0_40, %c173] : memref<2x512xf32, #tpu.memory_space<vmem>>, vector<2x256xf32>
      %86 = vector.extract_strided_slice %25 {offsets = [0, 42], sizes = [2, 1], strides = [1, 1]} : vector<2x49xf32> to vector<2x1xf32>
      %87 = vector.broadcast %86 : vector<2x1xf32> to vector<2x256xf32>
      %88 = arith.mulf %87, %85 : vector<2x256xf32>
      %89 = arith.addf %84, %88 : vector<2x256xf32>
      %90 = vector.broadcast %53 : vector<1x256xf32> to vector<2x256xf32>
      %91 = arith.mulf %89, %90 : vector<2x256xf32>
      %92 = arith.addf %45, %91 : vector<2x256xf32>
      %c2_i32 = arith.constant 2 : i32
      %93 = vector.broadcast %c2_i32 : i32 to vector<1x256xi32>
      %94 = arith.cmpi sge, %44, %93 : vector<1x256xi32>
      %c18_i32 = arith.constant 18 : i32
      %95 = vector.broadcast %c18_i32 : i32 to vector<1x256xi32>
      %96 = arith.cmpi slt, %44, %95 : vector<1x256xi32>
      %97 = arith.andi %94, %96 : vector<1x256xi1>
      %98 = arith.extui %97 : vector<1x256xi1> to vector<1x256xi32>
      %99 = arith.sitofp %98 : vector<1x256xi32> to vector<1x256xf32>
      %cst_41 = arith.constant 0.000000e+00 : f32
      %100 = vector.broadcast %cst_41 : f32 to vector<2x256xf32>
      %c0_42 = arith.constant 0 : index
      %c78 = arith.constant 78 : index
      %101 = vector.load %arg7[%c0_42, %c78] : memref<2x512xf32, #tpu.memory_space<vmem>>, vector<2x256xf32>
      %102 = vector.extract_strided_slice %25 {offsets = [0, 1], sizes = [2, 1], strides = [1, 1]} : vector<2x49xf32> to vector<2x1xf32>
      %103 = vector.broadcast %102 : vector<2x1xf32> to vector<2x256xf32>
      %104 = arith.mulf %103, %101 : vector<2x256xf32>
      %105 = arith.addf %100, %104 : vector<2x256xf32>
      %c0_43 = arith.constant 0 : index
      %c94 = arith.constant 94 : index
      %106 = vector.load %arg7[%c0_43, %c94] : memref<2x512xf32, #tpu.memory_space<vmem>>, vector<2x256xf32>
      %107 = vector.extract_strided_slice %25 {offsets = [0, 8], sizes = [2, 1], strides = [1, 1]} : vector<2x49xf32> to vector<2x1xf32>
      %108 = vector.broadcast %107 : vector<2x1xf32> to vector<2x256xf32>
      %109 = arith.mulf %108, %106 : vector<2x256xf32>
      %110 = arith.addf %105, %109 : vector<2x256xf32>
      %c0_44 = arith.constant 0 : index
      %c110 = arith.constant 110 : index
      %111 = vector.load %arg7[%c0_44, %c110] : memref<2x512xf32, #tpu.memory_space<vmem>>, vector<2x256xf32>
      %112 = vector.extract_strided_slice %25 {offsets = [0, 15], sizes = [2, 1], strides = [1, 1]} : vector<2x49xf32> to vector<2x1xf32>
      %113 = vector.broadcast %112 : vector<2x1xf32> to vector<2x256xf32>
      %114 = arith.mulf %113, %111 : vector<2x256xf32>
      %115 = arith.addf %110, %114 : vector<2x256xf32>
      %c0_45 = arith.constant 0 : index
      %c126 = arith.constant 126 : index
      %116 = vector.load %arg7[%c0_45, %c126] : memref<2x512xf32, #tpu.memory_space<vmem>>, vector<2x256xf32>
      %117 = vector.extract_strided_slice %25 {offsets = [0, 22], sizes = [2, 1], strides = [1, 1]} : vector<2x49xf32> to vector<2x1xf32>
      %118 = vector.broadcast %117 : vector<2x1xf32> to vector<2x256xf32>
      %119 = arith.mulf %118, %116 : vector<2x256xf32>
      %120 = arith.addf %115, %119 : vector<2x256xf32>
      %c0_46 = arith.constant 0 : index
      %c142 = arith.constant 142 : index
      %121 = vector.load %arg7[%c0_46, %c142] : memref<2x512xf32, #tpu.memory_space<vmem>>, vector<2x256xf32>
      %122 = vector.extract_strided_slice %25 {offsets = [0, 29], sizes = [2, 1], strides = [1, 1]} : vector<2x49xf32> to vector<2x1xf32>
      %123 = vector.broadcast %122 : vector<2x1xf32> to vector<2x256xf32>
      %124 = arith.mulf %123, %121 : vector<2x256xf32>
      %125 = arith.addf %120, %124 : vector<2x256xf32>
      %c0_47 = arith.constant 0 : index
      %c158 = arith.constant 158 : index
      %126 = vector.load %arg7[%c0_47, %c158] : memref<2x512xf32, #tpu.memory_space<vmem>>, vector<2x256xf32>
      %127 = vector.extract_strided_slice %25 {offsets = [0, 36], sizes = [2, 1], strides = [1, 1]} : vector<2x49xf32> to vector<2x1xf32>
      %128 = vector.broadcast %127 : vector<2x1xf32> to vector<2x256xf32>
      %129 = arith.mulf %128, %126 : vector<2x256xf32>
      %130 = arith.addf %125, %129 : vector<2x256xf32>
      %c0_48 = arith.constant 0 : index
      %c174 = arith.constant 174 : index
      %131 = vector.load %arg7[%c0_48, %c174] : memref<2x512xf32, #tpu.memory_space<vmem>>, vector<2x256xf32>
      %132 = vector.extract_strided_slice %25 {offsets = [0, 43], sizes = [2, 1], strides = [1, 1]} : vector<2x49xf32> to vector<2x1xf32>
      %133 = vector.broadcast %132 : vector<2x1xf32> to vector<2x256xf32>
      %134 = arith.mulf %133, %131 : vector<2x256xf32>
      %135 = arith.addf %130, %134 : vector<2x256xf32>
      %136 = vector.broadcast %99 : vector<1x256xf32> to vector<2x256xf32>
      %137 = arith.mulf %135, %136 : vector<2x256xf32>
      %138 = arith.addf %46, %137 : vector<2x256xf32>
      %c1_i32_49 = arith.constant 1 : i32
      %139 = vector.broadcast %c1_i32_49 : i32 to vector<1x256xi32>
      %140 = arith.cmpi sge, %44, %139 : vector<1x256xi32>
      %c17_i32 = arith.constant 17 : i32
      %141 = vector.broadcast %c17_i32 : i32 to vector<1x256xi32>
      %142 = arith.cmpi slt, %44, %141 : vector<1x256xi32>
      %143 = arith.andi %140, %142 : vector<1x256xi1>
      %144 = arith.extui %143 : vector<1x256xi1> to vector<1x256xi32>
      %145 = arith.sitofp %144 : vector<1x256xi32> to vector<1x256xf32>
      %cst_50 = arith.constant 0.000000e+00 : f32
      %146 = vector.broadcast %cst_50 : f32 to vector<2x256xf32>
      %c0_51 = arith.constant 0 : index
      %c79 = arith.constant 79 : index
      %147 = vector.load %arg7[%c0_51, %c79] : memref<2x512xf32, #tpu.memory_space<vmem>>, vector<2x256xf32>
      %148 = vector.extract_strided_slice %25 {offsets = [0, 2], sizes = [2, 1], strides = [1, 1]} : vector<2x49xf32> to vector<2x1xf32>
      %149 = vector.broadcast %148 : vector<2x1xf32> to vector<2x256xf32>
      %150 = arith.mulf %149, %147 : vector<2x256xf32>
      %151 = arith.addf %146, %150 : vector<2x256xf32>
      %c0_52 = arith.constant 0 : index
      %c95 = arith.constant 95 : index
      %152 = vector.load %arg7[%c0_52, %c95] : memref<2x512xf32, #tpu.memory_space<vmem>>, vector<2x256xf32>
      %153 = vector.extract_strided_slice %25 {offsets = [0, 9], sizes = [2, 1], strides = [1, 1]} : vector<2x49xf32> to vector<2x1xf32>
      %154 = vector.broadcast %153 : vector<2x1xf32> to vector<2x256xf32>
      %155 = arith.mulf %154, %152 : vector<2x256xf32>
      %156 = arith.addf %151, %155 : vector<2x256xf32>
      %c0_53 = arith.constant 0 : index
      %c111 = arith.constant 111 : index
      %157 = vector.load %arg7[%c0_53, %c111] : memref<2x512xf32, #tpu.memory_space<vmem>>, vector<2x256xf32>
      %158 = vector.extract_strided_slice %25 {offsets = [0, 16], sizes = [2, 1], strides = [1, 1]} : vector<2x49xf32> to vector<2x1xf32>
      %159 = vector.broadcast %158 : vector<2x1xf32> to vector<2x256xf32>
      %160 = arith.mulf %159, %157 : vector<2x256xf32>
      %161 = arith.addf %156, %160 : vector<2x256xf32>
      %c0_54 = arith.constant 0 : index
      %c127 = arith.constant 127 : index
      %162 = vector.load %arg7[%c0_54, %c127] : memref<2x512xf32, #tpu.memory_space<vmem>>, vector<2x256xf32>
      %163 = vector.extract_strided_slice %25 {offsets = [0, 23], sizes = [2, 1], strides = [1, 1]} : vector<2x49xf32> to vector<2x1xf32>
      %164 = vector.broadcast %163 : vector<2x1xf32> to vector<2x256xf32>
      %165 = arith.mulf %164, %162 : vector<2x256xf32>
      %166 = arith.addf %161, %165 : vector<2x256xf32>
      %c0_55 = arith.constant 0 : index
      %c143 = arith.constant 143 : index
      %167 = vector.load %arg7[%c0_55, %c143] : memref<2x512xf32, #tpu.memory_space<vmem>>, vector<2x256xf32>
      %168 = vector.extract_strided_slice %25 {offsets = [0, 30], sizes = [2, 1], strides = [1, 1]} : vector<2x49xf32> to vector<2x1xf32>
      %169 = vector.broadcast %168 : vector<2x1xf32> to vector<2x256xf32>
      %170 = arith.mulf %169, %167 : vector<2x256xf32>
      %171 = arith.addf %166, %170 : vector<2x256xf32>
      %c0_56 = arith.constant 0 : index
      %c159 = arith.constant 159 : index
      %172 = vector.load %arg7[%c0_56, %c159] : memref<2x512xf32, #tpu.memory_space<vmem>>, vector<2x256xf32>
      %173 = vector.extract_strided_slice %25 {offsets = [0, 37], sizes = [2, 1], strides = [1, 1]} : vector<2x49xf32> to vector<2x1xf32>
      %174 = vector.broadcast %173 : vector<2x1xf32> to vector<2x256xf32>
      %175 = arith.mulf %174, %172 : vector<2x256xf32>
      %176 = arith.addf %171, %175 : vector<2x256xf32>
      %c0_57 = arith.constant 0 : index
      %c175 = arith.constant 175 : index
      %177 = vector.load %arg7[%c0_57, %c175] : memref<2x512xf32, #tpu.memory_space<vmem>>, vector<2x256xf32>
      %178 = vector.extract_strided_slice %25 {offsets = [0, 44], sizes = [2, 1], strides = [1, 1]} : vector<2x49xf32> to vector<2x1xf32>
      %179 = vector.broadcast %178 : vector<2x1xf32> to vector<2x256xf32>
      %180 = arith.mulf %179, %177 : vector<2x256xf32>
      %181 = arith.addf %176, %180 : vector<2x256xf32>
      %182 = vector.broadcast %145 : vector<1x256xf32> to vector<2x256xf32>
      %183 = arith.mulf %181, %182 : vector<2x256xf32>
      %184 = arith.addf %92, %183 : vector<2x256xf32>
      %c0_i32_58 = arith.constant 0 : i32
      %185 = vector.broadcast %c0_i32_58 : i32 to vector<1x256xi32>
      %186 = arith.cmpi sge, %44, %185 : vector<1x256xi32>
      %c16_i32_59 = arith.constant 16 : i32
      %187 = vector.broadcast %c16_i32_59 : i32 to vector<1x256xi32>
      %188 = arith.cmpi slt, %44, %187 : vector<1x256xi32>
      %189 = arith.andi %186, %188 : vector<1x256xi1>
      %190 = arith.extui %189 : vector<1x256xi1> to vector<1x256xi32>
      %191 = arith.sitofp %190 : vector<1x256xi32> to vector<1x256xf32>
      %cst_60 = arith.constant 0.000000e+00 : f32
      %192 = vector.broadcast %cst_60 : f32 to vector<2x256xf32>
      %c0_61 = arith.constant 0 : index
      %c80 = arith.constant 80 : index
      %193 = vector.load %arg7[%c0_61, %c80] : memref<2x512xf32, #tpu.memory_space<vmem>>, vector<2x256xf32>
      %194 = vector.extract_strided_slice %25 {offsets = [0, 3], sizes = [2, 1], strides = [1, 1]} : vector<2x49xf32> to vector<2x1xf32>
      %195 = vector.broadcast %194 : vector<2x1xf32> to vector<2x256xf32>
      %196 = arith.mulf %195, %193 : vector<2x256xf32>
      %197 = arith.addf %192, %196 : vector<2x256xf32>
      %c0_62 = arith.constant 0 : index
      %c96 = arith.constant 96 : index
      %198 = vector.load %arg7[%c0_62, %c96] : memref<2x512xf32, #tpu.memory_space<vmem>>, vector<2x256xf32>
      %199 = vector.extract_strided_slice %25 {offsets = [0, 10], sizes = [2, 1], strides = [1, 1]} : vector<2x49xf32> to vector<2x1xf32>
      %200 = vector.broadcast %199 : vector<2x1xf32> to vector<2x256xf32>
      %201 = arith.mulf %200, %198 : vector<2x256xf32>
      %202 = arith.addf %197, %201 : vector<2x256xf32>
      %c0_63 = arith.constant 0 : index
      %c112 = arith.constant 112 : index
      %203 = vector.load %arg7[%c0_63, %c112] : memref<2x512xf32, #tpu.memory_space<vmem>>, vector<2x256xf32>
      %204 = vector.extract_strided_slice %25 {offsets = [0, 17], sizes = [2, 1], strides = [1, 1]} : vector<2x49xf32> to vector<2x1xf32>
      %205 = vector.broadcast %204 : vector<2x1xf32> to vector<2x256xf32>
      %206 = arith.mulf %205, %203 : vector<2x256xf32>
      %207 = arith.addf %202, %206 : vector<2x256xf32>
      %c0_64 = arith.constant 0 : index
      %c128_65 = arith.constant 128 : index
      %208 = vector.load %arg7[%c0_64, %c128_65] : memref<2x512xf32, #tpu.memory_space<vmem>>, vector<2x256xf32>
      %209 = vector.extract_strided_slice %25 {offsets = [0, 24], sizes = [2, 1], strides = [1, 1]} : vector<2x49xf32> to vector<2x1xf32>
      %210 = vector.broadcast %209 : vector<2x1xf32> to vector<2x256xf32>
      %211 = arith.mulf %210, %208 : vector<2x256xf32>
      %212 = arith.addf %207, %211 : vector<2x256xf32>
      %c0_66 = arith.constant 0 : index
      %c144 = arith.constant 144 : index
      %213 = vector.load %arg7[%c0_66, %c144] : memref<2x512xf32, #tpu.memory_space<vmem>>, vector<2x256xf32>
      %214 = vector.extract_strided_slice %25 {offsets = [0, 31], sizes = [2, 1], strides = [1, 1]} : vector<2x49xf32> to vector<2x1xf32>
      %215 = vector.broadcast %214 : vector<2x1xf32> to vector<2x256xf32>
      %216 = arith.mulf %215, %213 : vector<2x256xf32>
      %217 = arith.addf %212, %216 : vector<2x256xf32>
      %c0_67 = arith.constant 0 : index
      %c160 = arith.constant 160 : index
      %218 = vector.load %arg7[%c0_67, %c160] : memref<2x512xf32, #tpu.memory_space<vmem>>, vector<2x256xf32>
      %219 = vector.extract_strided_slice %25 {offsets = [0, 38], sizes = [2, 1], strides = [1, 1]} : vector<2x49xf32> to vector<2x1xf32>
      %220 = vector.broadcast %219 : vector<2x1xf32> to vector<2x256xf32>
      %221 = arith.mulf %220, %218 : vector<2x256xf32>
      %222 = arith.addf %217, %221 : vector<2x256xf32>
      %c0_68 = arith.constant 0 : index
      %c176 = arith.constant 176 : index
      %223 = vector.load %arg7[%c0_68, %c176] : memref<2x512xf32, #tpu.memory_space<vmem>>, vector<2x256xf32>
      %224 = vector.extract_strided_slice %25 {offsets = [0, 45], sizes = [2, 1], strides = [1, 1]} : vector<2x49xf32> to vector<2x1xf32>
      %225 = vector.broadcast %224 : vector<2x1xf32> to vector<2x256xf32>
      %226 = arith.mulf %225, %223 : vector<2x256xf32>
      %227 = arith.addf %222, %226 : vector<2x256xf32>
      %228 = vector.broadcast %191 : vector<1x256xf32> to vector<2x256xf32>
      %229 = arith.mulf %227, %228 : vector<2x256xf32>
      %230 = arith.addf %138, %229 : vector<2x256xf32>
      %c-1_i32 = arith.constant -1 : i32
      %231 = vector.broadcast %c-1_i32 : i32 to vector<1x256xi32>
      %232 = arith.cmpi sge, %44, %231 : vector<1x256xi32>
      %c15_i32 = arith.constant 15 : i32
      %233 = vector.broadcast %c15_i32 : i32 to vector<1x256xi32>
      %234 = arith.cmpi slt, %44, %233 : vector<1x256xi32>
      %235 = arith.andi %232, %234 : vector<1x256xi1>
      %236 = arith.extui %235 : vector<1x256xi1> to vector<1x256xi32>
      %237 = arith.sitofp %236 : vector<1x256xi32> to vector<1x256xf32>
      %cst_69 = arith.constant 0.000000e+00 : f32
      %238 = vector.broadcast %cst_69 : f32 to vector<2x256xf32>
      %c0_70 = arith.constant 0 : index
      %c81 = arith.constant 81 : index
      %239 = vector.load %arg7[%c0_70, %c81] : memref<2x512xf32, #tpu.memory_space<vmem>>, vector<2x256xf32>
      %240 = vector.extract_strided_slice %25 {offsets = [0, 4], sizes = [2, 1], strides = [1, 1]} : vector<2x49xf32> to vector<2x1xf32>
      %241 = vector.broadcast %240 : vector<2x1xf32> to vector<2x256xf32>
      %242 = arith.mulf %241, %239 : vector<2x256xf32>
      %243 = arith.addf %238, %242 : vector<2x256xf32>
      %c0_71 = arith.constant 0 : index
      %c97 = arith.constant 97 : index
      %244 = vector.load %arg7[%c0_71, %c97] : memref<2x512xf32, #tpu.memory_space<vmem>>, vector<2x256xf32>
      %245 = vector.extract_strided_slice %25 {offsets = [0, 11], sizes = [2, 1], strides = [1, 1]} : vector<2x49xf32> to vector<2x1xf32>
      %246 = vector.broadcast %245 : vector<2x1xf32> to vector<2x256xf32>
      %247 = arith.mulf %246, %244 : vector<2x256xf32>
      %248 = arith.addf %243, %247 : vector<2x256xf32>
      %c0_72 = arith.constant 0 : index
      %c113 = arith.constant 113 : index
      %249 = vector.load %arg7[%c0_72, %c113] : memref<2x512xf32, #tpu.memory_space<vmem>>, vector<2x256xf32>
      %250 = vector.extract_strided_slice %25 {offsets = [0, 18], sizes = [2, 1], strides = [1, 1]} : vector<2x49xf32> to vector<2x1xf32>
      %251 = vector.broadcast %250 : vector<2x1xf32> to vector<2x256xf32>
      %252 = arith.mulf %251, %249 : vector<2x256xf32>
      %253 = arith.addf %248, %252 : vector<2x256xf32>
      %c0_73 = arith.constant 0 : index
      %c129 = arith.constant 129 : index
      %254 = vector.load %arg7[%c0_73, %c129] : memref<2x512xf32, #tpu.memory_space<vmem>>, vector<2x256xf32>
      %255 = vector.extract_strided_slice %25 {offsets = [0, 25], sizes = [2, 1], strides = [1, 1]} : vector<2x49xf32> to vector<2x1xf32>
      %256 = vector.broadcast %255 : vector<2x1xf32> to vector<2x256xf32>
      %257 = arith.mulf %256, %254 : vector<2x256xf32>
      %258 = arith.addf %253, %257 : vector<2x256xf32>
      %c0_74 = arith.constant 0 : index
      %c145 = arith.constant 145 : index
      %259 = vector.load %arg7[%c0_74, %c145] : memref<2x512xf32, #tpu.memory_space<vmem>>, vector<2x256xf32>
      %260 = vector.extract_strided_slice %25 {offsets = [0, 32], sizes = [2, 1], strides = [1, 1]} : vector<2x49xf32> to vector<2x1xf32>
      %261 = vector.broadcast %260 : vector<2x1xf32> to vector<2x256xf32>
      %262 = arith.mulf %261, %259 : vector<2x256xf32>
      %263 = arith.addf %258, %262 : vector<2x256xf32>
      %c0_75 = arith.constant 0 : index
      %c161 = arith.constant 161 : index
      %264 = vector.load %arg7[%c0_75, %c161] : memref<2x512xf32, #tpu.memory_space<vmem>>, vector<2x256xf32>
      %265 = vector.extract_strided_slice %25 {offsets = [0, 39], sizes = [2, 1], strides = [1, 1]} : vector<2x49xf32> to vector<2x1xf32>
      %266 = vector.broadcast %265 : vector<2x1xf32> to vector<2x256xf32>
      %267 = arith.mulf %266, %264 : vector<2x256xf32>
      %268 = arith.addf %263, %267 : vector<2x256xf32>
      %c0_76 = arith.constant 0 : index
      %c177 = arith.constant 177 : index
      %269 = vector.load %arg7[%c0_76, %c177] : memref<2x512xf32, #tpu.memory_space<vmem>>, vector<2x256xf32>
      %270 = vector.extract_strided_slice %25 {offsets = [0, 46], sizes = [2, 1], strides = [1, 1]} : vector<2x49xf32> to vector<2x1xf32>
      %271 = vector.broadcast %270 : vector<2x1xf32> to vector<2x256xf32>
      %272 = arith.mulf %271, %269 : vector<2x256xf32>
      %273 = arith.addf %268, %272 : vector<2x256xf32>
      %274 = vector.broadcast %237 : vector<1x256xf32> to vector<2x256xf32>
      %275 = arith.mulf %273, %274 : vector<2x256xf32>
      %276 = arith.addf %184, %275 : vector<2x256xf32>
      %c-2_i32 = arith.constant -2 : i32
      %277 = vector.broadcast %c-2_i32 : i32 to vector<1x256xi32>
      %278 = arith.cmpi sge, %44, %277 : vector<1x256xi32>
      %c14_i32 = arith.constant 14 : i32
      %279 = vector.broadcast %c14_i32 : i32 to vector<1x256xi32>
      %280 = arith.cmpi slt, %44, %279 : vector<1x256xi32>
      %281 = arith.andi %278, %280 : vector<1x256xi1>
      %282 = arith.extui %281 : vector<1x256xi1> to vector<1x256xi32>
      %283 = arith.sitofp %282 : vector<1x256xi32> to vector<1x256xf32>
      %cst_77 = arith.constant 0.000000e+00 : f32
      %284 = vector.broadcast %cst_77 : f32 to vector<2x256xf32>
      %c0_78 = arith.constant 0 : index
      %c82 = arith.constant 82 : index
      %285 = vector.load %arg7[%c0_78, %c82] : memref<2x512xf32, #tpu.memory_space<vmem>>, vector<2x256xf32>
      %286 = vector.extract_strided_slice %25 {offsets = [0, 5], sizes = [2, 1], strides = [1, 1]} : vector<2x49xf32> to vector<2x1xf32>
      %287 = vector.broadcast %286 : vector<2x1xf32> to vector<2x256xf32>
      %288 = arith.mulf %287, %285 : vector<2x256xf32>
      %289 = arith.addf %284, %288 : vector<2x256xf32>
      %c0_79 = arith.constant 0 : index
      %c98 = arith.constant 98 : index
      %290 = vector.load %arg7[%c0_79, %c98] : memref<2x512xf32, #tpu.memory_space<vmem>>, vector<2x256xf32>
      %291 = vector.extract_strided_slice %25 {offsets = [0, 12], sizes = [2, 1], strides = [1, 1]} : vector<2x49xf32> to vector<2x1xf32>
      %292 = vector.broadcast %291 : vector<2x1xf32> to vector<2x256xf32>
      %293 = arith.mulf %292, %290 : vector<2x256xf32>
      %294 = arith.addf %289, %293 : vector<2x256xf32>
      %c0_80 = arith.constant 0 : index
      %c114 = arith.constant 114 : index
      %295 = vector.load %arg7[%c0_80, %c114] : memref<2x512xf32, #tpu.memory_space<vmem>>, vector<2x256xf32>
      %296 = vector.extract_strided_slice %25 {offsets = [0, 19], sizes = [2, 1], strides = [1, 1]} : vector<2x49xf32> to vector<2x1xf32>
      %297 = vector.broadcast %296 : vector<2x1xf32> to vector<2x256xf32>
      %298 = arith.mulf %297, %295 : vector<2x256xf32>
      %299 = arith.addf %294, %298 : vector<2x256xf32>
      %c0_81 = arith.constant 0 : index
      %c130 = arith.constant 130 : index
      %300 = vector.load %arg7[%c0_81, %c130] : memref<2x512xf32, #tpu.memory_space<vmem>>, vector<2x256xf32>
      %301 = vector.extract_strided_slice %25 {offsets = [0, 26], sizes = [2, 1], strides = [1, 1]} : vector<2x49xf32> to vector<2x1xf32>
      %302 = vector.broadcast %301 : vector<2x1xf32> to vector<2x256xf32>
      %303 = arith.mulf %302, %300 : vector<2x256xf32>
      %304 = arith.addf %299, %303 : vector<2x256xf32>
      %c0_82 = arith.constant 0 : index
      %c146 = arith.constant 146 : index
      %305 = vector.load %arg7[%c0_82, %c146] : memref<2x512xf32, #tpu.memory_space<vmem>>, vector<2x256xf32>
      %306 = vector.extract_strided_slice %25 {offsets = [0, 33], sizes = [2, 1], strides = [1, 1]} : vector<2x49xf32> to vector<2x1xf32>
      %307 = vector.broadcast %306 : vector<2x1xf32> to vector<2x256xf32>
      %308 = arith.mulf %307, %305 : vector<2x256xf32>
      %309 = arith.addf %304, %308 : vector<2x256xf32>
      %c0_83 = arith.constant 0 : index
      %c162 = arith.constant 162 : index
      %310 = vector.load %arg7[%c0_83, %c162] : memref<2x512xf32, #tpu.memory_space<vmem>>, vector<2x256xf32>
      %311 = vector.extract_strided_slice %25 {offsets = [0, 40], sizes = [2, 1], strides = [1, 1]} : vector<2x49xf32> to vector<2x1xf32>
      %312 = vector.broadcast %311 : vector<2x1xf32> to vector<2x256xf32>
      %313 = arith.mulf %312, %310 : vector<2x256xf32>
      %314 = arith.addf %309, %313 : vector<2x256xf32>
      %c0_84 = arith.constant 0 : index
      %c178 = arith.constant 178 : index
      %315 = vector.load %arg7[%c0_84, %c178] : memref<2x512xf32, #tpu.memory_space<vmem>>, vector<2x256xf32>
      %316 = vector.extract_strided_slice %25 {offsets = [0, 47], sizes = [2, 1], strides = [1, 1]} : vector<2x49xf32> to vector<2x1xf32>
      %317 = vector.broadcast %316 : vector<2x1xf32> to vector<2x256xf32>
      %318 = arith.mulf %317, %315 : vector<2x256xf32>
      %319 = arith.addf %314, %318 : vector<2x256xf32>
      %320 = vector.broadcast %283 : vector<1x256xf32> to vector<2x256xf32>
      %321 = arith.mulf %319, %320 : vector<2x256xf32>
      %322 = arith.addf %230, %321 : vector<2x256xf32>
      %c-3_i32 = arith.constant -3 : i32
      %323 = vector.broadcast %c-3_i32 : i32 to vector<1x256xi32>
      %324 = arith.cmpi sge, %44, %323 : vector<1x256xi32>
      %c13_i32 = arith.constant 13 : i32
      %325 = vector.broadcast %c13_i32 : i32 to vector<1x256xi32>
      %326 = arith.cmpi slt, %44, %325 : vector<1x256xi32>
      %327 = arith.andi %324, %326 : vector<1x256xi1>
      %328 = arith.extui %327 : vector<1x256xi1> to vector<1x256xi32>
      %329 = arith.sitofp %328 : vector<1x256xi32> to vector<1x256xf32>
      %cst_85 = arith.constant 0.000000e+00 : f32
      %330 = vector.broadcast %cst_85 : f32 to vector<2x256xf32>
      %c0_86 = arith.constant 0 : index
      %c83 = arith.constant 83 : index
      %331 = vector.load %arg7[%c0_86, %c83] : memref<2x512xf32, #tpu.memory_space<vmem>>, vector<2x256xf32>
      %332 = vector.extract_strided_slice %25 {offsets = [0, 6], sizes = [2, 1], strides = [1, 1]} : vector<2x49xf32> to vector<2x1xf32>
      %333 = vector.broadcast %332 : vector<2x1xf32> to vector<2x256xf32>
      %334 = arith.mulf %333, %331 : vector<2x256xf32>
      %335 = arith.addf %330, %334 : vector<2x256xf32>
      %c0_87 = arith.constant 0 : index
      %c99 = arith.constant 99 : index
      %336 = vector.load %arg7[%c0_87, %c99] : memref<2x512xf32, #tpu.memory_space<vmem>>, vector<2x256xf32>
      %337 = vector.extract_strided_slice %25 {offsets = [0, 13], sizes = [2, 1], strides = [1, 1]} : vector<2x49xf32> to vector<2x1xf32>
      %338 = vector.broadcast %337 : vector<2x1xf32> to vector<2x256xf32>
      %339 = arith.mulf %338, %336 : vector<2x256xf32>
      %340 = arith.addf %335, %339 : vector<2x256xf32>
      %c0_88 = arith.constant 0 : index
      %c115 = arith.constant 115 : index
      %341 = vector.load %arg7[%c0_88, %c115] : memref<2x512xf32, #tpu.memory_space<vmem>>, vector<2x256xf32>
      %342 = vector.extract_strided_slice %25 {offsets = [0, 20], sizes = [2, 1], strides = [1, 1]} : vector<2x49xf32> to vector<2x1xf32>
      %343 = vector.broadcast %342 : vector<2x1xf32> to vector<2x256xf32>
      %344 = arith.mulf %343, %341 : vector<2x256xf32>
      %345 = arith.addf %340, %344 : vector<2x256xf32>
      %c0_89 = arith.constant 0 : index
      %c131 = arith.constant 131 : index
      %346 = vector.load %arg7[%c0_89, %c131] : memref<2x512xf32, #tpu.memory_space<vmem>>, vector<2x256xf32>
      %347 = vector.extract_strided_slice %25 {offsets = [0, 27], sizes = [2, 1], strides = [1, 1]} : vector<2x49xf32> to vector<2x1xf32>
      %348 = vector.broadcast %347 : vector<2x1xf32> to vector<2x256xf32>
      %349 = arith.mulf %348, %346 : vector<2x256xf32>
      %350 = arith.addf %345, %349 : vector<2x256xf32>
      %c0_90 = arith.constant 0 : index
      %c147 = arith.constant 147 : index
      %351 = vector.load %arg7[%c0_90, %c147] : memref<2x512xf32, #tpu.memory_space<vmem>>, vector<2x256xf32>
      %352 = vector.extract_strided_slice %25 {offsets = [0, 34], sizes = [2, 1], strides = [1, 1]} : vector<2x49xf32> to vector<2x1xf32>
      %353 = vector.broadcast %352 : vector<2x1xf32> to vector<2x256xf32>
      %354 = arith.mulf %353, %351 : vector<2x256xf32>
      %355 = arith.addf %350, %354 : vector<2x256xf32>
      %c0_91 = arith.constant 0 : index
      %c163 = arith.constant 163 : index
      %356 = vector.load %arg7[%c0_91, %c163] : memref<2x512xf32, #tpu.memory_space<vmem>>, vector<2x256xf32>
      %357 = vector.extract_strided_slice %25 {offsets = [0, 41], sizes = [2, 1], strides = [1, 1]} : vector<2x49xf32> to vector<2x1xf32>
      %358 = vector.broadcast %357 : vector<2x1xf32> to vector<2x256xf32>
      %359 = arith.mulf %358, %356 : vector<2x256xf32>
      %360 = arith.addf %355, %359 : vector<2x256xf32>
      %c0_92 = arith.constant 0 : index
      %c179 = arith.constant 179 : index
      %361 = vector.load %arg7[%c0_92, %c179] : memref<2x512xf32, #tpu.memory_space<vmem>>, vector<2x256xf32>
      %362 = vector.extract_strided_slice %25 {offsets = [0, 48], sizes = [2, 1], strides = [1, 1]} : vector<2x49xf32> to vector<2x1xf32>
      %363 = vector.broadcast %362 : vector<2x1xf32> to vector<2x256xf32>
      %364 = arith.mulf %363, %361 : vector<2x256xf32>
      %365 = arith.addf %360, %364 : vector<2x256xf32>
      %366 = vector.broadcast %329 : vector<1x256xf32> to vector<2x256xf32>
      %367 = arith.mulf %365, %366 : vector<2x256xf32>
      %368 = arith.addf %276, %367 : vector<2x256xf32>
      %369 = arith.addf %368, %322 : vector<2x256xf32>
      %370 = vector.extract_strided_slice %369 {offsets = [0, 0], sizes = [1, 256], strides = [1, 1]} : vector<2x256xf32> to vector<1x256xf32>
      %371 = vector.extract_strided_slice %369 {offsets = [1, 0], sizes = [1, 256], strides = [1, 1]} : vector<2x256xf32> to vector<1x256xf32>
      %372 = arith.addf %370, %371 : vector<1x256xf32>
      %373 = arith.negf %372 : vector<1x256xf32>
      %374 = math.exp %373 : vector<1x256xf32>
      %cst_93 = arith.constant 1.000000e+00 : f32
      %375 = vector.broadcast %cst_93 : f32 to vector<1x256xf32>
      %376 = arith.addf %375, %374 : vector<1x256xf32>
      %377 = arith.divf %375, %376 : vector<1x256xf32>
      %378 = vector.shape_cast %377 : vector<1x256xf32> to vector<1x1x256xf32>
      %c0_94 = arith.constant 0 : index
      %c0_95 = arith.constant 0 : index
      %c0_96 = arith.constant 0 : index
      %379 = vector.load %arg4[%c0_94, %c0_95, %c0_96] : memref<1x1x256xf32, #tpu.memory_space<vmem>>, vector<1x1x256xf32>
      tpu.vector_store %arg4[%c0_94, %c0_95, %c0_96], %378 {strides = array<i32>} : memref<1x1x256xf32, #tpu.memory_space<vmem>>, vector<1x1x256xf32>,
    } else {
    }
    return
  }
  func.func @transform_0(%arg0: i32, %arg1: i32) -> (i32, i32, i32) {
    %c0_i32 = arith.constant 0 : i32
    %c0_i32_0 = arith.constant 0 : i32
    return %arg0, %arg1, %c0_i32 : i32, i32, i32
  }
  func.func @transform_1(%arg0: i32, %arg1: i32) -> (i32, i32) {
    %c0_i32 = arith.constant 0 : i32
    %c0_i32_0 = arith.constant 0 : i32
    %c0_i32_1 = arith.constant 0 : i32
    return %c0_i32, %c0_i32_0 : i32, i32
  }
  func.func @transform_2(%arg0: i32, %arg1: i32) -> (i32, i32, i32) {
    %c0_i32 = arith.constant 0 : i32
    %c0_i32_0 = arith.constant 0 : i32
    %c0_i32_1 = arith.constant 0 : i32
    return %arg0, %c0_i32, %c0_i32_0 : i32, i32, i32
  }
}

</mosaic_0001>

<bundles_post_ra>
// kernel: tpu_custom_call.1
= control target key start
LH: loop header
LB: loop body
LE: loop exit
PB: predicated region body
PF: predicated region fallthrough
CT: control target
= control target key end

     0   :  { %s3142_s0 = inlined_call_operand.hbm [shape: f32[2,32,256], index: 0, kind: input, shape index: {}]   ;;  %s3143_s1 = inlined_call_operand.hbm [shape: f32[2,49], index: 1, kind: input, shape index: {}]   ;;  %s3144_s2 = inlined_call_operand.hbm [shape: f32[2,1,256], index: 2, kind: output, shape index: {}]  }
   0x1   :  { %3154 = sst [smem:[#allocation20_spill]] %s3143_s1 }
   0x2   :  { %3155 = sst [smem:[#allocation21_spill]] %s3144_s2 }
   0x3   :  { %7 = vsyncpa [#allocation6], 0 }
   0x4   :  { %9 = vsyncpa [#allocation6 + $0x1], 0 }
   0x5   :  { %10 = vsyncpa [#allocation9], 0 }
   0x6   :  { %11 = vsyncpa [#allocation7], 0 }
   0x7   :  { %13 = vsyncpa [#allocation7 + $0x1], 0  ;;  %s2392_s9 = smov 0   ;;  %s2394_s10 = smov 0  }
   0x8   :  { %s2396_s11 = smov 0   ;;  %s2398_s12 = smov 0  }
   0x9   :  { %s2400_s13 = smov 0   ;;  %s2402_s14 = smov 0  }
   0xa   :  { %s2404_s15 = smov 0   ;;  %s2406_s16 = smov 0  }
   0xb   :  { %s2408_s17 = smov 0   ;;  %s2410_s18 = smov 0  }
   0xc   :  { %s2412_s19 = smov 0  }
   0xd LB: > { %3156 = sst [smem:[#allocation14_spill]] %s2232_s9  ;;  %s1778_s20 = sadd.s32 4294967295, %s2272_s19   ;;  %s2272_s19 = sphi %s2412_s19, %s19_s19   ;;  %s2268_s18 = sphi %s2410_s18, %s3190_s18   ;;  %s2264_s17 = sphi %s2408_s17, %s3189_s17   ;;  %s2260_s16 = sphi %s2406_s16, %s3188_s16   ;;  %s2256_s15 = sphi %s2404_s15, %s3179_s15   ;;  %s2252_s14 = sphi %s2402_s14, %s3187_s14   ;;  %s2248_s13 = sphi %s2400_s13, %s3186_s13   ;;  %s2244_s12 = sphi %s2398_s12, %s3185_s12   ;;  %s2240_s11 = sphi %s2396_s11, %s3184_s11   ;;  %s2236_s10 = sphi %s2394_s10, %s3183_s10   ;;  %s2232_s9 = sphi %s2392_s9, %s3182_s9  }
   0xe   : > { %3157 = sst [smem:[#allocation15_spill]] %s2264_s17  ;;  %s1779_s21 = sadd.s32 4294967294, %s2272_s19  }
   0xf   : > { %3158 = sst [smem:[#allocation16_spill]] %s2272_s19  ;;  %p47_p0 = scmp.ne.s32.totalorder %s2252_s14, %s2248_s13 }
  0x10   : > { %p48_p1 = scmp.eq.s32.totalorder %s2272_s19, 0  ;;  %p53_p2 = scmp.ne.s32.totalorder %s2248_s13, %s2244_s12 }
  0x11   : > { %p2452_p3 = scmp.eq.s32.totalorder %s1778_s20, 0  ;;  %p97_p5 = scmp.ne.s32.totalorder %s2240_s11, %s2236_s10 }
  0x12   : > { %p2457_p4 = por %p48_p1, %p47_p0  ;;  %p98_p7 = scmp.eq.s32.totalorder %s1778_s20, 3 }
  0x13   : > { %p2465_p6 = por %p2452_p3, %p53_p2  ;;  %p103_p8 = scmp.ne.s32.totalorder %s2236_s10, %s2232_s9 }
  0x14   : > { %p104_p9 = scmp.eq.s32.totalorder %s1779_s21, 3  ;;  %p2471_p10 = por %p98_p7, %p97_p5 }
  0x15   : > { %p1780_p11 = scmp.ge.s32.totalorder %s2272_s19, 1  ;;  %p111_p13 = scmp.lt.s32.totalorder %s2272_s19, 5 }
  0x16   : > { %s3162_s27 = scalar_select %p2471_p10, 1, 0 }
  0x17   : > { %p2476_p12 = por %p104_p9, %p103_p8  ;;  %s3166_s1 = sld [smem:[#allocation20_spill]] }
  0x18   : > { %3163 = sst [smem:[#allocation17_spill]] %s3162_s27  ;;  %p2484_p0 = pnand %p1780_p11, %p111_p13 }
  0x19   : > { %s3164_s28 = scalar_select %p2476_p12, 1, 0 }
  0x1a   : > { %p1821_p1 = pneg %p2484_p0  ;;  %s2274_s5 = smov [#allocation8]  }
  0x1b   : > { %3165 = sst [smem:[#allocation18_spill]] %s3164_s28  ;;  %s125_s6 = sshll.u32 %s2274_s5, 4  ;;  %s126_s6 = int_to_ptr.vmem [resolvable:$true] %s125_s6 }
  0x1c   : > { %p1834_p2 = scmp.lt.s32.totalorder %s2272_s19, 4  ;;  %p1822_p5 = pnand %p1821_p1, %p2452_p3 }
  0x1d   : > { %s123_s3 = sshll.u32 %s3166_s1, 4  ;;  %s28_s8 = sadd.s32 1, %s2264_s17  ;;  %s124_s3 = int_to_ptr.hbm [resolvable:$true] %s123_s3 }
  0x1e   : > { %p2495_p7 = pnand %p1834_p2, %p2457_p4  ;;  %s31_s12 = sadd.s32 1, %s2268_s18 }
  0x1f   : > { %1824 = dma.hbm_to_vmem [thread:$0]  (!%p1822_p5), %s124_s3, 32, %s126_s6, [#allocation9]  }
  0x20   : > { %p29_p8 = scmp.ge.s32.totalorder %s28_s8, 2  ;;  %s136_s20 = sand.u32 1, %s2252_s14  }
  0x21   : > { %s1783_s21 = sshll.u32 %s136_s20, 5  ;;  %s1812_s25 = sshll.u32 %s2264_s17, 2 }
  0x22   : > { %s3192_s8 = smov (%p29_p8, %s28_s8), 0  ;;  %s3194_s12 = smov (!%p29_p8, %s31_s12), %s2268_s18 }
  0x23   : > { %3169 = sst [smem:[#allocation19_spill]] %s3192_s8  ;;  %s36_s29 = ssub.s32 %s2264_s17, %s3192_s8 }
  0x24   : > { %p33_p4 = scmp.ge.s32.totalorder %s3194_s12, 2  ;;  %s1786_s30 = sshll.u32 %s2268_s18, 3 }
  0x25   : > { %s140_s5 = scalar_lea.vmem [#allocation5], %s1783_s21  ;;  %s146_s6 = sadd.s32 %s1812_s25, %s1786_s30 }
  0x26   : > { %s151_s3 = sshll.u32 %s140_s5, 4  ;;  %s3196_s12 = smov (%p33_p4, %s3194_s12), 0  ;;  %s152_s3 = int_to_ptr.vmem [resolvable:$true] %s151_s3 }
  0x27   : > { %s35_s22 = ssub.s32 %s2268_s18, %s3196_s12  ;;  %s1787_s24 = sshll.u32 %s146_s6, 3 }
  0x28   : > { %s37_s1 = sor.u32 %s36_s29, %s35_s22  ;;  %p85_p9 = scmp.eq.s32.totalorder %s35_s22, 0 }
  0x29   : > { %p38_p11 = scmp.eq.s32.totalorder %s37_s1, 0  ;;  %s148_s9 = scalar_lea.hbm %s3142_s0, %s1787_s24 }
  0x2a   : > { %s3170_s19 = sadd.s32 1, %s2240_s11  ;;  %s3171_s21 = sadd.s32 1, %s2252_s14 }
  0x2b   : > { %s2519_s17 = scalar_select %p85_p9, %s2240_s11, %s3170_s19  }
  0x2c   : > { %s2524_s5 = scalar_select %p38_p11, %s2252_s14, %s3171_s21  }
  0x2d   : > { %s149_s2 = sshll.u32 %s148_s9, 4  ;;  %s137_s27 = scalar_lea.sflag [#allocation6], %s136_s20  ;;  %s150_s2 = int_to_ptr.hbm [resolvable:$true] %s149_s2 }
  0x2e   : > { %s2275_s25 = smov 256   ;;  %s2276_s30 = smov 16  }
  0x2f   : > { %1828 = dma.hbm_to_vmem [thread:$0]  (!%p2495_p7), %s150_s2, 512, %s152_s3, %s137_s27, %s2275_s25, %s2275_s25, %s2276_s30  }
  0x30   : > { %163 = sbr.rel (%p2484_p0) target bundleno = 862 (0x35e), region = 28  ;;  %s165_s1 = sand.u32 (!%p2484_p0), 1, %s2248_s13  }
  0x31   : > { %s1789_s22 = sshll.u32 (!%p2484_p0), %s165_s1, 5  ;;  %s166_s24 = scalar_lea.sflag (!%p2484_p0), [#allocation6], %s165_s1 }
  0x32   : > { %s169_s19 = scalar_lea.vmem (!%p2484_p0), [#allocation5], %s1789_s22 }
  0x35   : > { %2219 = dma.done.wait (%p2465_p6), %s166_s24, 512  }
  0x36   : > { %2221 = vsyncadd (%p2465_p6), %s166_s24, 4294966784 }
  0x37   : > { %2223 = dma.done.wait (%p2452_p3), [#allocation9], 32  }
  0x38   : > { %2225 = vsyncadd (%p2452_p3), [#allocation9], 4294967264  ;;  %s193_s2 = sand.u32 1, %s2236_s10   ;;  %p1792_p13 = scmp.ne.s32.totalorder %s2256_s15, 0 }
  0x39   : > { %s2542_s9 = sshll.u32 %s193_s2, 1 }
  0x3a   : > { %s195_s27 = scalar_lea.vmem [#allocation10], %s2542_s9  ;;  %200 = sbr.rel (%p1792_p13) target bundleno = 68 (0x44), region = 40 }
  0x3f   : > { %v201_v0 = vlaneseq  ;;  %v2277_v1 = vmov 0.0   ;;  %v2278_v2 = vmov -inf  }
  0x41   : > { %vm203_vm0 = vcmp.lt.s32.totalorder %v201_v0, 256 }
  0x42   : > { %205 = vst.msk [vmem:[#allocation2] sm:$0x3] %vm203_vm0, %v2277_v1 }
  0x43   : > { %206 = vst.msk [vmem:[#allocation3] sm:$0x3] %vm203_vm0, %v2278_v2 }
  0x44 PF: > { %v207_v3 = vld [vmem:[%s169_s19] sm:$0xff]  ;;  %v208_v4 = vld [vmem:[%s169_s19 + $0x8] sm:$0xff]  ;;  %v209_v5 = vld [vmem:[%s169_s19 + $0x10] sm:$0xff]  ;;  %v233_v31 = vlaneseq  ;;  %vm229_vm1 = vcmask 1040384   ;;  %p1793_p3 = scmp.ne.s32.totalorder %s2256_s15, 1 }
  0x45   : > { %v210_v6 = vld [vmem:[%s169_s19 + $0x18] sm:$0xff]  ;;  %v212_v7 = vadd.f32 %v209_v5, %v207_v3  ;;  %v239_v8 = vmax.f32 %v207_v3, %v209_v5  ;;  %s2284_s15 = smov (!%p1793_p3), 51   ;;  %s2286_s23 = smov (!%p1793_p3), 35  }
  0x46   : > { %v219_v9 = vadd.f32 %v210_v6, %v208_v4  ;;  %v246_v10 = vmax.f32 %v208_v4, %v210_v6  ;;  %vm2548_vm2 = vcmp.lt.s32.totalorder %v233_v31, 256  ;;  %s2287_s26 = smov (!%p1793_p3), 19   ;;  %s2288_s28 = smov (!%p1793_p3), 3  }
  0x47   : > { %v213_v11 = vrot.slane %v212_v7, 4  ;;  %v240_v12 = vrot.slane %v239_v8, 4  ;;  %s2290_s4 = smov (!%p1793_p3), 115   ;;  %s2292_s7 = smov (!%p1793_p3), 99  }
  0x48   : > { %v220_v13 = vrot.slane %v219_v9, 4  ;;  %v247_v14 = vrot.slane %v246_v10, 4  ;;  %s2294_s8 = smov (!%p1793_p3), 83   ;;  %s2297_s20 = smov (!%p1793_p3), 34  }
  0x49   : > { %v214_v15 = vadd.f32 %v213_v11, %v212_v7  ;;  %v241_v16 = vmax.f32 %v239_v8, %v240_v12  ;;  %v211_v36 = vld [vmem:[#allocation2] sm:$0x3]  ;;  %s2298_s29 = smov (!%p1793_p3), 50   ;;  %s2299_s3 = smov (!%p1793_p3), 2  }
  0x4a   : > { %v221_v17 = vadd.f32 %v220_v13, %v219_v9  ;;  %v248_v18 = vmax.f32 %v246_v10, %v247_v14  ;;  %v238_v38 = vld [vmem:[#allocation3] sm:$0x3]  ;;  %s2301_s6 = smov (!%p1793_p3), 18   ;;  %s2303_s21 = smov (!%p1793_p3), 98  }
  0x4b   : > { %v215_v19 = vrot.slane %v214_v15, 2  ;;  %v242_v20 = vrot.slane %v241_v16, 2  ;;  %s2306_s25 = smov (!%p1793_p3), 114   ;;  %s2307_s30 = smov (!%p1793_p3), 49  }
  0x4c   : > { %v222_v21 = vrot.slane %v221_v17, 2  ;;  %v249_v22 = vrot.slane %v248_v18, 2  ;;  %s2310_s1 = smov (!%p1793_p3), 82   ;;  %s2311_s22 = smov (!%p1793_p3), 17  }
  0x4d   : > { %v216_v23 = vadd.f32 %v215_v19, %v214_v15  ;;  %v243_v24 = vmax.f32 %v241_v16, %v242_v20  ;;  %s2314_s24 = smov (!%p1793_p3), 33   ;;  %s2315_s19 = smov (!%p1793_p3), 113  }
  0x4e   : > { %v223_v25 = vadd.f32 %v222_v21, %v221_v17  ;;  %v250_v26 = vmax.f32 %v248_v18, %v249_v22 }
  0x4f   : > { %v217_v27 = vrot.slane %v216_v23, 1  ;;  %v244_v28 = vrot.slane %v243_v24, 1 }
  0x50   : > { %v224_v29 = vrot.slane %v223_v25, 1  ;;  %v251_v30 = vrot.slane %v250_v26, 1 }
  0x51   : > { %v218_v32 = vadd.f32 %v217_v27, %v216_v23  ;;  %v245_v34 = vmax.f32 %v243_v24, %v244_v28 }
  0x52   : > { %v225_v33 = vadd.f32 %v224_v29, %v223_v25  ;;  %v252_v35 = vmax.f32 %v250_v26, %v251_v30 }
  0x54   : > { %v228_v37 = vrot.slane %v225_v33, 7  ;;  %v255_v39 = vrot.slane %v252_v35, 7 }
  0x56   : > { %v230_v40 = vsel %vm229_vm1, %v218_v32, %v228_v37  ;;  %v256_v42 = vsel %vm229_vm1, %v245_v34, %v255_v39  ;;  %263 = sbr.rel (%p1793_p3) target bundleno = 842 (0x34a), region = 44 }
  0x57   : > { %v232_v43 = vadd.f32 %v230_v40, %v211_v36  ;;  %v258_v44 = vmax.f32 %v238_v38, %v256_v42 }
  0x59   : > { %237 = vst.msk [vmem:[#allocation2] sm:$0x3] %vm2548_vm2, %v232_v43 }
  0x5a   : > { %259 = vst.msk [vmem:[#allocation3] sm:$0x3] %vm2548_vm2, %v258_v44 }
  0x5b   : > { %v2558_v45 = vld [vmem:[#allocation8] sm:$0x3]  ;;  %v2279_v47 = vmov 0   ;;  %v2280_v48 = vmov 0.0   ;;  %v2281_v50 = vmov 7   ;;  %v2282_v52 = vmov 14  }
  0x5c   : > { %2028 = vset.pattern.permute.xlu0 %v2279_v47  ;;  %264 = vst [vmem:[#allocation4] sm:$0x3] %v2280_v48  ;;  %2029 = vset.pattern.permute.xlu2 %v2281_v50  ;;  %v2283_v54 = vmov 21   ;;  %v2285_v58 = vmov 28   ;;  %v2289_v10 = vmov 35   ;;  %v2291_v12 = vmov 42  }
  0x5d   : > { %313 = vperm.xlu0 %2028, %v2558_v45   ;;  %265 = vst [vmem:[#allocation4 + $0x6] sm:$0x3] %v2280_v48  ;;  %338 = vperm.xlu2 %2029, %v2558_v45   ;;  %v2293_v20 = vmov 1   ;;  %v2295_v26 = vmov 8   ;;  %v2296_v30 = vmov 15   ;;  %v2300_v44 = vmov 22  }
  0x5e   : > { %vm327_vm3 = vcmask 416768   ;;  %vm352_vm4 = vcmask 285696   ;;  %vm377_vm5 = vcmask 154624   ;;  %vm402_vm6 = vcmask 23552  }
  0x5f   : > { %vm427_vm7 = vcmask 941056   ;;  %vm452_vm8 = vcmask 809984   ;;  %vm477_vm9 = vcmask 678912   ;;  %vm516_vm10 = vcmask 408576  }
  0x60   : > { %v266_v46 = vld [vmem:[#allocation2] sm:$0x3]  ;;  %vm541_vm11 = vcmask 277504   ;;  %vm566_vm12 = vcmask 146432   ;;  %vm591_vm13 = vcmask 15360   ;;  %vm616_vm14 = vcmask 932864  }
  0x61   : > { %v269_v49 = vld [vmem:[#allocation3] sm:$0x3]  ;;  %268 = vst.msk [vmem:[#allocation4 + $0x2] ss:$2 sm:$0x3] %vm2548_vm2, %v266_v46  ;;  %v2302_v46 = vmov 29  }
  0x62   : > { %271 = vst.msk [vmem:[#allocation4 + $0x3] ss:$2 sm:$0x3] %vm2548_vm2, %v269_v49  ;;  %vm641_vm15 = vcmask 801792   ;;  %vm666_vm0 = vcmask 670720  }
  0x65   : > { %2030 = vset.pattern.permute.xlu2 %v2282_v52  ;;  %2031 = vset.pattern.permute.xlu0 %v2283_v54 }
  0x66   : > { %363 = vperm.xlu2 %2030, %v2558_v45  }
  0x69   : > { %v310_v51 = vld [vmem:[#allocation4] sm:$0x3f] }
  0x6a   : > { %317 = vst [vmem:[#allocation1] ss:$4 sm:$0xff] %v310_v51  ;;  %v336_v53 = vld [vmem:[#allocation4] sm:$0x3f] }
  0x6b   : > { %v361_v59 = vld [vmem:[#allocation4] sm:$0x3f] }
  0x6c   : > { %v386_v63 = vld [vmem:[#allocation4] sm:$0x3f] }
  0x6d   : > { %v411_v3 = vld [vmem:[#allocation4 + $0x2] sm:$0x3f] }
  0x6e   : > { %2032 = vset.pattern.permute.xlu2 %v2285_v58  ;;  %v436_v7 = vld [vmem:[#allocation4 + $0x2] sm:$0x3f] }
  0x6f   : > { %v461_v13 = vld [vmem:[#allocation4 + $0x2] sm:$0x3f] }
  0x70   : > { %v500_v17 = vld [vmem:[#allocation4] sm:$0x3f] }
  0x71   : > { %v319_v55 = vld.sshfl [vmem:[#allocation1 + $0x8] sm:$0xff pattern:$0x73625140]  ;;  %v318_v56 = vld.sshfl [vmem:[#allocation1] sm:$0xff pattern:$0x73625140] }
  0x72   : > { %323 = vrot.lane.b32.xlu1 %v319_v55, %s2284_s15  ;;  %321 = vrot.lane.b32.xlu0 %v318_v56, %s2284_s15  ;;  %v320_v57 = vld.sshfl [vmem:[#allocation1 + $0x10] sm:$0xff pattern:$0x73625140] }
  0x73   : > { %342 = vst [vmem:[#allocation1] ss:$4 sm:$0xff] %v336_v53  ;;  %v525_v22 = vld [vmem:[#allocation4] sm:$0x3f] }
  0x74   : > { %v550_v27 = vld [vmem:[#allocation4] sm:$0x3f] }
  0x75   : > { %v575_v37 = vld [vmem:[#allocation4] sm:$0x3f] }
  0x76   : > { %v600_v38 = vld [vmem:[#allocation4 + $0x2] sm:$0x3f] }
  0x77   : > { %v625_v49 = vld [vmem:[#allocation4 + $0x2] sm:$0x3f] }
  0x78   : > { %v650_v55 = vld [vmem:[#allocation4 + $0x2] sm:$0x3f] }
  0x7a   : > { %325 = vrot.lane.b32.xlu1 %v320_v57, %s2284_s15  ;;  %v344_v60 = vld.sshfl [vmem:[#allocation1 + $0x8] sm:$0xff pattern:$0x73625140]  ;;  %v343_v61 = vld.sshfl [vmem:[#allocation1] sm:$0xff pattern:$0x73625140] }
  0x7b   : > { %348 = vrot.lane.b32.xlu0 %v344_v60, %s2286_s23  ;;  %v345_v62 = vld.sshfl [vmem:[#allocation1 + $0x10] sm:$0xff pattern:$0x73625140]  ;;  %346 = vrot.lane.b32.xlu2 %v343_v61, %s2286_s23  ;;  %s2318_s15 = smov 1  }
  0x7c   : > { %367 = vst [vmem:[#allocation1] ss:$4 sm:$0xff] %v361_v59 }
  0x82   : > { %350 = vrot.lane.b32.xlu1 %v345_v62, %s2286_s23  ;;  %v2304_v62 = vmov 36   ;;  %s2319_s23 = smov 81  }
  0x83   : > { %v369_v0 = vld.sshfl [vmem:[#allocation1 + $0x8] sm:$0xff pattern:$0x73625140]  ;;  %v370_v1 = vld.sshfl [vmem:[#allocation1 + $0x10] sm:$0xff pattern:$0x73625140]  ;;  %413 = vperm.xlu2 %2032, %v2558_v45  }
  0x84   : > { %v368_v2 = vld.sshfl [vmem:[#allocation1] sm:$0xff pattern:$0x73625140] }
  0x85   : > { %371 = vrot.lane.b32.xlu0 %v368_v2, %s2287_s26  ;;  %392 = vst [vmem:[#allocation1] ss:$4 sm:$0xff] %v386_v63  ;;  %v2305_v63 = vmov 43  }
  0x8a   : > { %373 = vrot.lane.b32.xlu1 %v369_v0, %s2287_s26 }
  0x8b   : > { %375 = vrot.lane.b32.xlu2 %v370_v1, %s2287_s26  ;;  %s2322_s26 = smov 97  }
  0x8c   : > { %v394_v4 = vld.sshfl [vmem:[#allocation1 + $0x8] sm:$0xff pattern:$0x73625140]  ;;  %v393_v5 = vld.sshfl [vmem:[#allocation1] sm:$0xff pattern:$0x73625140]  ;;  %2034 = vset.pattern.permute.xlu2 %v2291_v12 }
  0x8d   : > { %388 = vperm.xlu0 %2031, %v2558_v45   ;;  %v395_v6 = vld.sshfl [vmem:[#allocation1 + $0x10] sm:$0xff pattern:$0x73625140] }
  0x8e   : > { %417 = vst [vmem:[#allocation1] ss:$4 sm:$0xff] %v411_v3 }
  0x92   : > { %396 = vrot.lane.b32.xlu1 %v393_v5, %s2288_s28 }
  0x93   : > { %398 = vrot.lane.b32.xlu2 %v394_v4, %s2288_s28  ;;  %v689_v4 = vld [vmem:[#allocation4] sm:$0x3f] }
  0x95   : > { %v419_v8 = vld.sshfl [vmem:[#allocation1 + $0x8] sm:$0xff pattern:$0x73625140]  ;;  %v420_v9 = vld.sshfl [vmem:[#allocation1 + $0x10] sm:$0xff pattern:$0x73625140]  ;;  %2033 = vset.pattern.permute.xlu0 %v2289_v10 }
  0x96   : > { %v418_v11 = vld.sshfl [vmem:[#allocation1] sm:$0xff pattern:$0x73625140] }
  0x97   : > { %421 = vrot.lane.b32.xlu0 %v418_v11, %s2290_s4  ;;  %442 = vst [vmem:[#allocation1] ss:$4 sm:$0xff] %v436_v7 }
  0x9a   : > { %400 = vrot.lane.b32.xlu1 %v395_v6, %s2288_s28  ;;  %s2323_s28 = smov 32  }
  0x9b   : > { %425 = vrot.lane.b32.xlu2 %v420_v9, %s2290_s4 }
  0x9e   : > { %v444_v14 = vld.sshfl [vmem:[#allocation1 + $0x8] sm:$0xff pattern:$0x73625140]  ;;  %v443_v15 = vld.sshfl [vmem:[#allocation1] sm:$0xff pattern:$0x73625140] }
  0x9f   : > { %438 = vperm.xlu0 %2033, %v2558_v45   ;;  %v445_v16 = vld.sshfl [vmem:[#allocation1 + $0x10] sm:$0xff pattern:$0x73625140] }
  0xa0   : > { %467 = vst [vmem:[#allocation1] ss:$4 sm:$0xff] %v461_v13 }
  0xa2   : > { %423 = vrot.lane.b32.xlu1 %v419_v8, %s2290_s4  ;;  %s2324_s4 = smov 48  }
  0xa3   : > { %448 = vrot.lane.b32.xlu2 %v444_v14, %s2292_s7  ;;  %v714_v14 = vld [vmem:[#allocation4] sm:$0x3f] }
  0xa7   : > { %v469_v18 = vld.sshfl [vmem:[#allocation1 + $0x8] sm:$0xff pattern:$0x73625140]  ;;  %v470_v19 = vld.sshfl [vmem:[#allocation1 + $0x10] sm:$0xff pattern:$0x73625140]  ;;  %2035 = vset.pattern.permute.xlu0 %v2293_v20 }
  0xa8   : > { %v468_v21 = vld.sshfl [vmem:[#allocation1] sm:$0xff pattern:$0x73625140] }
  0xa9   : > { %471 = vrot.lane.b32.xlu0 %v468_v21, %s2294_s8  ;;  %506 = vst [vmem:[#allocation1] ss:$4 sm:$0xff] %v500_v17 }
  0xaa   : > { %446 = vrot.lane.b32.xlu1 %v443_v15, %s2292_s7 }
  0xab   : > { %463 = vperm.xlu2 %2034, %v2558_v45  }
  0xb0   : > { %v508_v23 = vld.sshfl [vmem:[#allocation1 + $0x8] sm:$0xff pattern:$0x73625140]  ;;  %v507_v24 = vld.sshfl [vmem:[#allocation1] sm:$0xff pattern:$0x73625140] }
  0xb1   : > { %502 = vperm.xlu0 %2035, %v2558_v45   ;;  %v509_v25 = vld.sshfl [vmem:[#allocation1 + $0x10] sm:$0xff pattern:$0x73625140] }
  0xb2   : > { %450 = vrot.lane.b32.xlu1 %v445_v16, %s2292_s7  ;;  %531 = vst [vmem:[#allocation1] ss:$4 sm:$0xff] %v525_v22  ;;  %s2329_s7 = smov 16  }
  0xb3   : > { %475 = vrot.lane.b32.xlu2 %v470_v19, %s2294_s8 }
  0xb4   : > { %2036 = vset.pattern.permute.xlu2 %v2295_v26 }
  0xb7   : > { %v2574_v33 = vpop.permute.xlu2 %338 }
  0xb9   : > { %v533_v28 = vld.sshfl [vmem:[#allocation1 + $0x8] sm:$0xff pattern:$0x73625140]  ;;  %v534_v29 = vld.sshfl [vmem:[#allocation1 + $0x10] sm:$0xff pattern:$0x73625140]  ;;  %2037 = vset.pattern.permute.xlu0 %v2296_v30 }
  0xba   : > { %473 = vrot.lane.b32.xlu1 %v469_v18, %s2294_s8  ;;  %v532_v32 = vld.sshfl [vmem:[#allocation1] sm:$0xff pattern:$0x73625140]  ;;  %s2330_s8 = smov 96  }
  0xbb   : > { %535 = vrot.lane.b32.xlu0 %v532_v32, %s2297_s20  ;;  %512 = vrot.lane.b32.xlu2 %v508_v23, %s2298_s29  ;;  %556 = vst [vmem:[#allocation1] ss:$4 sm:$0xff] %v550_v27  ;;  %v739_v32 = vld [vmem:[#allocation4] sm:$0x3f] }
  0xc0   : > { %v2578_v39 = vpop.permute.xlu2 %363 }
  0xc2   : > { %510 = vrot.lane.b32.xlu1 %v507_v24, %s2298_s29  ;;  %v557_v34 = vld.sshfl [vmem:[#allocation1] sm:$0xff pattern:$0x73625140]  ;;  %v558_v35 = vld.sshfl [vmem:[#allocation1 + $0x8] sm:$0xff pattern:$0x73625140] }
  0xc3   : > { %527 = vperm.xlu2 %2036, %v2558_v45   ;;  %552 = vperm.xlu0 %2037, %v2558_v45   ;;  %v559_v36 = vld.sshfl [vmem:[#allocation1 + $0x10] sm:$0xff pattern:$0x73625140]  ;;  %v2308_v24 = vmov 2  }
  0xc4   : > { %581 = vst [vmem:[#allocation1] ss:$4 sm:$0xff] %v575_v37 }
  0xca   : > { %514 = vrot.lane.b32.xlu1 %v509_v25, %s2298_s29  ;;  %v2309_v25 = vmov 9   ;;  %s2334_s29 = smov 47  }
  0xcb   : > { %539 = vrot.lane.b32.xlu2 %v534_v29, %s2297_s20  ;;  %v583_v40 = vld.sshfl [vmem:[#allocation1 + $0x8] sm:$0xff pattern:$0x73625140]  ;;  %v584_v42 = vld.sshfl [vmem:[#allocation1 + $0x10] sm:$0xff pattern:$0x73625140]  ;;  %2039 = vset.pattern.permute.xlu0 %v2302_v46 }
  0xcc   : > { %v582_v43 = vld.sshfl [vmem:[#allocation1] sm:$0xff pattern:$0x73625140]  ;;  %2038 = vset.pattern.permute.xlu2 %v2300_v44 }
  0xcd   : > { %585 = vrot.lane.b32.xlu0 %v582_v43, %s2299_s3  ;;  %606 = vst [vmem:[#allocation1] ss:$4 sm:$0xff] %v600_v38 }
  0xcf   : > { %v2582_v53 = vpop.permute.xlu0 %313 }
  0xd2   : > { %537 = vrot.lane.b32.xlu1 %v533_v28, %s2297_s20  ;;  %s2332_s20 = smov 112  }
  0xd3   : > { %562 = vrot.lane.b32.xlu2 %v558_v35, %s2301_s6 }
  0xd4   : > { %v608_v50 = vld.sshfl [vmem:[#allocation1 + $0x8] sm:$0xff pattern:$0x73625140]  ;;  %v607_v51 = vld.sshfl [vmem:[#allocation1] sm:$0xff pattern:$0x73625140] }
  0xd5   : > { %v347_v47 = vpop.permute.xlu2 %346  ;;  %602 = vperm.xlu0 %2039, %v2558_v45   ;;  %v609_v52 = vld.sshfl [vmem:[#allocation1 + $0x10] sm:$0xff pattern:$0x73625140] }
  0xd6   : > { %631 = vst [vmem:[#allocation1] ss:$4 sm:$0xff] %v625_v49 }
  0xda   : > { %560 = vrot.lane.b32.xlu1 %v557_v34, %s2301_s6 }
  0xdb   : > { %577 = vperm.xlu2 %2038, %v2558_v45  }
  0xdd   : > { %v2585_v54 = vpop.permute.xlu2 %413  ;;  %v633_v56 = vld.sshfl [vmem:[#allocation1 + $0x8] sm:$0xff pattern:$0x73625140]  ;;  %v634_v57 = vld.sshfl [vmem:[#allocation1 + $0x10] sm:$0xff pattern:$0x73625140]  ;;  %2041 = vset.pattern.permute.xlu0 %v2305_v63 }
  0xde   : > { %v632_v58 = vld.sshfl [vmem:[#allocation1] sm:$0xff pattern:$0x73625140]  ;;  %v2312_v63 = vmov 16  }
  0xdf   : > { %635 = vrot.lane.b32.xlu0 %v632_v58, %s2303_s21  ;;  %656 = vst [vmem:[#allocation1] ss:$4 sm:$0xff] %v650_v55 }
  0xe2   : > { %564 = vrot.lane.b32.xlu1 %v559_v36, %s2301_s6  ;;  %s2338_s6 = smov 15  }
  0xe3   : > { %589 = vrot.lane.b32.xlu2 %v584_v42, %s2299_s3 }
  0xe4   : > { %v2589_v59 = vpop.permute.xlu1 %323  ;;  %v322_v60 = vpop.permute.xlu0 %321  ;;  %2040 = vset.pattern.permute.xlu2 %v2304_v62 }
  0xe5   : > { %v2591_v61 = vpop.permute.xlu2 %375  ;;  %v328_v0 = vsel %vm327_vm3, %v322_v60, %v2589_v59 }
  0xe6   : > { %v658_v6 = vld.sshfl [vmem:[#allocation1 + $0x8] sm:$0xff pattern:$0x73625140]  ;;  %v332_v7 = vmul.f32 %v328_v0, %v2582_v53  ;;  %v657_v9 = vld.sshfl [vmem:[#allocation1] sm:$0xff pattern:$0x73625140] }
  0xe7   : > { %652 = vperm.xlu0 %2041, %v2558_v45   ;;  %v659_v10 = vld.sshfl [vmem:[#allocation1 + $0x10] sm:$0xff pattern:$0x73625140]  ;;  %v2313_v0 = vmov 23  }
  0xe8   : > { %695 = vst [vmem:[#allocation1] ss:$4 sm:$0xff] %v689_v4 }
  0xea   : > { %587 = vrot.lane.b32.xlu1 %v583_v40, %s2299_s3  ;;  %s2337_s3 = smov 80  }
  0xeb   : > { %612 = vrot.lane.b32.xlu2 %v608_v50, %s2306_s25 }
  0xec   : > { %v326_v1 = vpop.permute.xlu1 %325 }
  0xed   : > { %v349_v2 = vpop.permute.xlu0 %348  ;;  %v399_v3 = vpop.permute.xlu2 %398  ;;  %v329_v36 = vsel %vm327_vm3, %v2589_v59, %v326_v1  ;;  %vm705_vm3 = vcmask 400384  }
  0xee   : > { %v353_v5 = vsel %vm352_vm4, %v347_v47, %v349_v2  ;;  %v333_v44 = vmul.f32 %v329_v36, %v2582_v53  ;;  %v839_v36 = vld [vmem:[#allocation4 + $0x2] sm:$0x3f] }
  0xef   : > { %v357_v8 = vmul.f32 %v353_v5, %v2574_v33  ;;  %v2603_v15 = vld.sshfl [vmem:[#allocation1 + $0x8] sm:$0xff pattern:$0x73625140]  ;;  %v698_v16 = vld.sshfl [vmem:[#allocation1 + $0x10] sm:$0xff pattern:$0x73625140]  ;;  %2043 = vset.pattern.permute.xlu0 %v2309_v25 }
  0xf0   : > { %v696_v18 = vld.sshfl [vmem:[#allocation1] sm:$0xff pattern:$0x73625140] }
  0xf1   : > { %v359_v11 = vadd.f32 %v357_v8, %v332_v7  ;;  %699 = vrot.lane.b32.xlu0 %v696_v18, %s2307_s30  ;;  %720 = vst [vmem:[#allocation1] ss:$4 sm:$0xff] %v714_v14 }
  0xf2   : > { %610 = vrot.lane.b32.xlu1 %v607_v51, %s2306_s25 }
  0xf3   : > { %627 = vperm.xlu2 %2040, %v2558_v45  }
  0xf4   : > { %v351_v12 = vpop.permute.xlu1 %350 }
  0xf5   : > { %v2601_v13 = vpop.permute.xlu2 %425  ;;  %v354_v28 = vsel %vm352_vm4, %v349_v2, %v351_v12  ;;  %vm730_vm4 = vcmask 269312  }
  0xf6   : > { %v358_v38 = vmul.f32 %v354_v28, %v2574_v33 }
  0xf7   : > { %v372_v17 = vpop.permute.xlu0 %371 }
  0xf8   : > { %v722_v35 = vld.sshfl [vmem:[#allocation1 + $0x8] sm:$0xff pattern:$0x73625140]  ;;  %v721_v42 = vld.sshfl [vmem:[#allocation1] sm:$0xff pattern:$0x73625140]  ;;  %v360_v47 = vadd.f32 %v358_v38, %v333_v44 }
  0xf9   : > { %716 = vperm.xlu0 %2043, %v2558_v45   ;;  %v723_v43 = vld.sshfl [vmem:[#allocation1 + $0x10] sm:$0xff pattern:$0x73625140] }
  0xfa   : > { %614 = vrot.lane.b32.xlu1 %v609_v52, %s2306_s25  ;;  %745 = vst [vmem:[#allocation1] ss:$4 sm:$0xff] %v739_v32  ;;  %v2317_v32 = vmov 37   ;;  %s2342_s25 = smov 111  }
  0xfb   : > { %639 = vrot.lane.b32.xlu2 %v634_v57, %s2303_s21 }
  0xfc   : > { %v374_v19 = vpop.permute.xlu1 %373  ;;  %2042 = vset.pattern.permute.xlu2 %v2308_v24 }
  0xfd   : > { %v378_v20 = vsel %vm377_vm5, %v372_v17, %v374_v19  ;;  %v2608_v21 = vpop.permute.xlu2 %448  ;;  %v379_v37 = vsel %vm377_vm5, %v374_v19, %v2591_v61  ;;  %vm755_vm5 = vcmask 138240  }
  0xfe   : > { %v382_v22 = vmul.f32 %v378_v20, %v2578_v39  ;;  %v383_v46 = vmul.f32 %v379_v37, %v2578_v39  ;;  %v814_v20 = vld [vmem:[#allocation4 + $0x2] sm:$0x3f] }
  0xff   : > { %v389_v26 = vpop.permute.xlu0 %388 }
 0x100   : > { %v384_v23 = vadd.f32 %v382_v22, %v359_v11  ;;  %v385_v52 = vadd.f32 %v383_v46, %v360_v47  ;;  %v878_v46 = vld [vmem:[#allocation4] sm:$0x3f] }
 0x101   : > { %v747_v58 = vld.sshfl [vmem:[#allocation1 + $0x8] sm:$0xff pattern:$0x73625140]  ;;  %v748_v39 = vld.sshfl [vmem:[#allocation1 + $0x10] sm:$0xff pattern:$0x73625140]  ;;  %2045 = vset.pattern.permute.xlu0 %v2313_v0 }
 0x102   : > { %637 = vrot.lane.b32.xlu1 %v633_v56, %s2303_s21  ;;  %v764_v56 = vld [vmem:[#allocation4] sm:$0x3f]  ;;  %v746_v53 = vld.sshfl [vmem:[#allocation1] sm:$0xff pattern:$0x73625140]  ;;  %s2339_s21 = smov 31  }
 0x103   : > { %662 = vrot.lane.b32.xlu2 %v658_v6, %s2310_s1  ;;  %749 = vrot.lane.b32.xlu0 %v746_v53, %s2311_s22  ;;  %770 = vst [vmem:[#allocation1] ss:$4 sm:$0xff] %v764_v56 }
 0x104   : > { %v397_v27 = vpop.permute.xlu1 %396 }
 0x105   : > { %v403_v29 = vsel %vm402_vm6, %v397_v27, %v399_v3  ;;  %v2615_v30 = vpop.permute.xlu2 %463 }
 0x106   : > { %v407_v34 = vmul.f32 %v403_v29, %v389_v26  ;;  %v2316_v29 = vmov 30  }
 0x108   : > { %v409_v40 = vadd.f32 %v407_v34, %v384_v23 }
 0x109   : > { %v422_v57 = vpop.permute.xlu0 %421 }
 0x10a   : > { %660 = vrot.lane.b32.xlu1 %v657_v9, %s2310_s1  ;;  %v772_v5 = vld.sshfl [vmem:[#allocation1 + $0x8] sm:$0xff pattern:$0x73625140]  ;;  %v771_v9 = vld.sshfl [vmem:[#allocation1] sm:$0xff pattern:$0x73625140] }
 0x10b   : > { %691 = vperm.xlu2 %2042, %v2558_v45   ;;  %766 = vperm.xlu0 %2045, %v2558_v45  }
 0x10c   : > { %v401_v49 = vpop.permute.xlu1 %400 }
 0x10d   : > { %v404_v50 = vsel %vm402_vm6, %v399_v3, %v401_v49  ;;  %v2626_v51 = vpop.permute.xlu2 %475  ;;  %v789_v3 = vld [vmem:[#allocation4 + $0x2] sm:$0x3f]  ;;  %vm780_vm6 = vcmask 7168  }
 0x10e   : > { %v408_v55 = vmul.f32 %v404_v50, %v389_v26 }
 0x110   : > { %v410_v33 = vadd.f32 %v408_v55, %v385_v52 }
 0x111   : > { %v439_v2 = vpop.permute.xlu0 %438 }
 0x112   : > { %664 = vrot.lane.b32.xlu1 %v659_v10, %s2310_s1  ;;  %v773_v10 = vld.sshfl [vmem:[#allocation1 + $0x10] sm:$0xff pattern:$0x73625140]  ;;  %s2346_s1 = smov 79  }
 0x113   : > { %703 = vrot.lane.b32.xlu2 %v698_v16, %s2307_s30  ;;  %795 = vst [vmem:[#allocation1] ss:$4 sm:$0xff] %v789_v3  ;;  %2047 = vset.pattern.permute.xlu0 %v2317_v32 }
 0x114   : > { %v424_v59 = vpop.permute.xlu1 %423  ;;  %2044 = vset.pattern.permute.xlu2 %v2312_v63 }
 0x115   : > { %v428_v60 = vsel %vm427_vm7, %v422_v57, %v424_v59  ;;  %v2631_v61 = vpop.permute.xlu2 %512  ;;  %v429_v11 = vsel %vm427_vm7, %v424_v59, %v2601_v13  ;;  %v2320_v59 = vmov 44   ;;  %vm805_vm7 = vcmask 924672  }
 0x116   : > { %v432_v62 = vmul.f32 %v428_v60, %v2585_v54  ;;  %v433_v14 = vmul.f32 %v429_v11, %v2585_v54  ;;  %v2321_v60 = vmov 3  }
 0x118   : > { %v434_v1 = vadd.f32 %v432_v62, %v409_v40  ;;  %v435_v18 = vadd.f32 %v433_v14, %v410_v33 }
 0x11a   : > { %701 = vrot.lane.b32.xlu1 %v2603_v15, %s2307_s30  ;;  %v797_v23 = vld.sshfl [vmem:[#allocation1 + $0x8] sm:$0xff pattern:$0x73625140]  ;;  %v798_v13 = vld.sshfl [vmem:[#allocation1 + $0x10] sm:$0xff pattern:$0x73625140] }
 0x11b   : > { %726 = vrot.lane.b32.xlu2 %v722_v35, %s2314_s24  ;;  %v472_v24 = vpop.permute.xlu0 %471  ;;  %v796_v54 = vld.sshfl [vmem:[#allocation1] sm:$0xff pattern:$0x73625140]  ;;  %s2345_s30 = smov 127  }
 0x11c   : > { %v447_v4 = vpop.permute.xlu1 %446  ;;  %799 = vrot.lane.b32.xlu0 %v796_v54, %s2315_s19  ;;  %820 = vst [vmem:[#allocation1] ss:$4 sm:$0xff] %v814_v20 }
 0x11d   : > { %v453_v6 = vsel %vm452_vm8, %v447_v4, %v2608_v21  ;;  %v2639_v7 = vpop.permute.xlu2 %527 }
 0x11e   : > { %v457_v8 = vmul.f32 %v453_v6, %v439_v2 }
 0x120   : > { %v459_v12 = vadd.f32 %v457_v8, %v434_v1 }
 0x122   : > { %724 = vrot.lane.b32.xlu1 %v721_v42, %s2314_s24 }
 0x123   : > { %741 = vperm.xlu2 %2044, %v2558_v45   ;;  %v822_v37 = vld.sshfl [vmem:[#allocation1 + $0x8] sm:$0xff pattern:$0x73625140]  ;;  %v821_v38 = vld.sshfl [vmem:[#allocation1] sm:$0xff pattern:$0x73625140]  ;;  %v503_v42 = vpop.permute.xlu0 %502 }
 0x124   : > { %v451_v15 = vpop.permute.xlu1 %450  ;;  %816 = vperm.xlu0 %2047, %v2558_v45   ;;  %v823_v40 = vld.sshfl [vmem:[#allocation1 + $0x10] sm:$0xff pattern:$0x73625140] }
 0x125   : > { %v454_v16 = vsel %vm452_vm8, %v2608_v21, %v451_v15  ;;  %v2647_v17 = vpop.permute.xlu2 %539  ;;  %845 = vst [vmem:[#allocation1] ss:$4 sm:$0xff] %v839_v36  ;;  %vm830_vm8 = vcmask 793600  }
 0x126   : > { %v458_v19 = vmul.f32 %v454_v16, %v439_v2  ;;  %v903_v2 = vld [vmem:[#allocation4] sm:$0x3f] }
 0x128   : > { %v2649_v22 = vadd.f32 %v458_v19, %v435_v18  ;;  %v928_v19 = vld [vmem:[#allocation4] sm:$0x3f] }
 0x12a   : > { %728 = vrot.lane.b32.xlu1 %v723_v43, %s2314_s24  ;;  %s2350_s24 = smov 30  }
 0x12b   : > { %753 = vrot.lane.b32.xlu2 %v748_v39, %s2311_s22 }
 0x12c   : > { %v2653_v21 = vpop.permute.xlu1 %473  ;;  %2046 = vset.pattern.permute.xlu2 %v2316_v29  ;;  %v2669_v47 = vld.sshfl [vmem:[#allocation1 + $0x8] sm:$0xff pattern:$0x73625140]  ;;  %v848_v49 = vld.sshfl [vmem:[#allocation1 + $0x10] sm:$0xff pattern:$0x73625140]  ;;  %2049 = vset.pattern.permute.xlu0 %v2321_v60 }
 0x12d   : > { %v478_v25 = vsel %vm477_vm9, %v472_v24, %v2653_v21  ;;  %v2657_v26 = vpop.permute.xlu2 %562  ;;  %v536_v50 = vpop.permute.xlu0 %535  ;;  %v846_v52 = vld.sshfl [vmem:[#allocation1] sm:$0xff pattern:$0x73625140]  ;;  %v2327_v60 = vmov 31  }
 0x12e   : > { %v482_v27 = vmul.f32 %v478_v25, %v2615_v30  ;;  %849 = vrot.lane.b32.xlu0 %v846_v52, %s2319_s23  ;;  %884 = vst [vmem:[#allocation1] ss:$4 sm:$0xff] %v878_v46  ;;  %v968_v52 = vld [vmem:[#allocation4 + $0x2] sm:$0x3f] }
 0x130   : > { %v2660_v28 = vadd.f32 %v482_v27, %v459_v12 }
 0x132   : > { %751 = vrot.lane.b32.xlu1 %v747_v58, %s2311_s22  ;;  %s2349_s22 = smov 95  }
 0x133   : > { %776 = vrot.lane.b32.xlu2 %v772_v5, %s2318_s15 }
 0x134   : > { %v511_v34 = vpop.permute.xlu1 %510 }
 0x135   : > { %v2664_v35 = vpop.permute.xlu2 %577  ;;  %v517_v55 = vsel %vm516_vm10, %v511_v34, %v2631_v61  ;;  %v553_v62 = vpop.permute.xlu0 %552  ;;  %v886_v4 = vld.sshfl [vmem:[#allocation1 + $0x8] sm:$0xff pattern:$0x73625140]  ;;  %v885_v8 = vld.sshfl [vmem:[#allocation1] sm:$0xff pattern:$0x73625140] }
 0x136   : > { %v521_v58 = vmul.f32 %v517_v55, %v503_v42  ;;  %880 = vperm.xlu0 %2049, %v2558_v45   ;;  %v2325_v34 = vmov 17  }
 0x13a   : > { %774 = vrot.lane.b32.xlu1 %v771_v9, %s2318_s15  ;;  %v2687_v9 = vld.sshfl [vmem:[#allocation1 + $0x10] sm:$0xff pattern:$0x73625140] }
 0x13b   : > { %791 = vperm.xlu2 %2046, %v2558_v45   ;;  %909 = vst [vmem:[#allocation1] ss:$4 sm:$0xff] %v903_v2  ;;  %v993_v2 = vld [vmem:[#allocation4 + $0x2] sm:$0x3f] }
 0x13c   : > { %v515_v43 = vpop.permute.xlu1 %514 }
 0x13d   : > { %v2667_v44 = vpop.permute.xlu2 %589 }
 0x13e   : > { %2051 = vset.pattern.permute.xlu0 %v2325_v34  ;;  %v2333_v34 = vmov 38  }
 0x142   : > { %778 = vrot.lane.b32.xlu1 %v773_v10, %s2318_s15  ;;  %v518_v10 = vsel %vm516_vm10, %v2631_v61, %v515_v43  ;;  %v912_v61 = vld.sshfl [vmem:[#allocation1 + $0x10] sm:$0xff pattern:$0x73625140]  ;;  %vm855_vm10 = vcmask 662528   ;;  %s2354_s15 = smov 126  }
 0x143   : > { %803 = vrot.lane.b32.xlu2 %v798_v13, %s2315_s19  ;;  %v522_v12 = vmul.f32 %v518_v10, %v503_v42  ;;  %v586_v13 = vpop.permute.xlu0 %585  ;;  %v2328_v10 = vmov 24  }
 0x144   : > { %v538_v33 = vpop.permute.xlu1 %537  ;;  %2048 = vset.pattern.permute.xlu2 %v2320_v59 }
 0x145   : > { %v542_v56 = vsel %vm541_vm11, %v536_v50, %v538_v33  ;;  %v2676_v57 = vpop.permute.xlu2 %612  ;;  %v543_v5 = vsel %vm541_vm11, %v538_v33, %v2647_v17 }
 0x146   : > { %v546_v39 = vmul.f32 %v542_v56, %v2639_v7  ;;  %v547_v11 = vmul.f32 %v543_v5, %v2639_v7  ;;  %v910_v7 = vld.sshfl [vmem:[#allocation1] sm:$0xff pattern:$0x73625140] }
 0x147   : > { %913 = vrot.lane.b32.xlu0 %v910_v7, %s2323_s28 }
 0x148   : > { %v548_v53 = vadd.f32 %v546_v39, %v521_v58  ;;  %v549_v17 = vadd.f32 %v547_v11, %v522_v12 }
 0x14a   : > { %801 = vrot.lane.b32.xlu1 %v797_v23, %s2315_s19  ;;  %v2697_v23 = vld.sshfl [vmem:[#allocation1 + $0x8] sm:$0xff pattern:$0x73625140]  ;;  %s2351_s19 = smov 46  }
 0x14b   : > { %826 = vrot.lane.b32.xlu2 %v822_v37, %s2322_s26  ;;  %934 = vst [vmem:[#allocation1] ss:$4 sm:$0xff] %v928_v19  ;;  %v603_v32 = vpop.permute.xlu0 %602  ;;  %v953_v37 = vld [vmem:[#allocation4 + $0x2] sm:$0xf] }
 0x14c   : > { %v561_v63 = vpop.permute.xlu1 %560 }
 0x14d   : > { %v567_v0 = vsel %vm566_vm12, %v561_v63, %v2657_v26  ;;  %v2683_v1 = vpop.permute.xlu2 %627 }
 0x14e   : > { %v571_v3 = vmul.f32 %v567_v0, %v553_v62 }
 0x14f   : > { %930 = vperm.xlu0 %2051, %v2558_v45  }
 0x150   : > { %v573_v6 = vadd.f32 %v571_v3, %v548_v53 }
 0x152   : > { %824 = vrot.lane.b32.xlu1 %v821_v38, %s2322_s26  ;;  %v2707_v29 = vld.sshfl [vmem:[#allocation1] sm:$0xff pattern:$0x73625140]  ;;  %v936_v36 = vld.sshfl [vmem:[#allocation1 + $0x8] sm:$0xff pattern:$0x73625140] }
 0x153   : > { %841 = vperm.xlu2 %2048, %v2558_v45   ;;  %v2711_v42 = vld.sshfl [vmem:[#allocation1 + $0x10] sm:$0xff pattern:$0x73625140] }
 0x154   : > { %v565_v14 = vpop.permute.xlu1 %564  ;;  %959 = vst [vmem:[#allocation1] ss:$4 sm:$0xff] %v953_v37 }
 0x155   : > { %v568_v15 = vsel %vm566_vm12, %v2657_v26, %v565_v14  ;;  %v2695_v16 = vpop.permute.xlu2 %639 }
 0x156   : > { %v572_v18 = vmul.f32 %v568_v15, %v553_v62  ;;  %v636_v62 = vpop.permute.xlu0 %635 }
 0x157   : > { %2053 = vset.pattern.permute.xlu0 %v2327_v60 }
 0x158   : > { %v574_v20 = vadd.f32 %v572_v18, %v549_v17  ;;  %970 = vperm.xlu0 %2053, %v2558_v45   ;;  %v1018_v17 = vld [vmem:[#allocation4 + $0x2] sm:$0x3f] }
 0x15a   : > { %828 = vrot.lane.b32.xlu1 %v823_v40, %s2322_s26  ;;  %v2326_v40 = vmov 10   ;;  %s2358_s26 = smov 94  }
 0x15b   : > { %853 = vrot.lane.b32.xlu2 %v848_v49, %s2319_s23  ;;  %v2722_v56 = vld.sshfl [vmem:[#allocation1] sm:$0xff pattern:$0x73625140]  ;;  %v2724_v58 = vld.sshfl [vmem:[#allocation1 + $0x8] sm:$0xff pattern:$0x73625140] }
 0x15c   : > { %v588_v24 = vpop.permute.xlu1 %587  ;;  %2050 = vset.pattern.permute.xlu2 %v2326_v40  ;;  %974 = vst [vmem:[#allocation1] ss:$4 sm:$0xff] %v968_v52 }
 0x15d   : > { %v592_v54 = vsel %vm591_vm13, %v586_v13, %v588_v24  ;;  %v2702_v25 = vpop.permute.xlu2 %662  ;;  %v593_v49 = vsel %vm591_vm13, %v588_v24, %v2667_v44 }
 0x15e   : > { %v596_v26 = vmul.f32 %v592_v54, %v2664_v35  ;;  %v597_v55 = vmul.f32 %v593_v49, %v2664_v35 }
 0x160   : > { %v598_v27 = vadd.f32 %v596_v26, %v573_v6  ;;  %v599_v44 = vadd.f32 %v597_v55, %v574_v20 }
 0x162   : > { %851 = vrot.lane.b32.xlu1 %v2669_v47, %s2319_s23  ;;  %s2357_s23 = smov 14  }
 0x163   : > { %890 = vrot.lane.b32.xlu2 %v886_v4, %s2324_s4  ;;  %v976_v4 = vld.sshfl [vmem:[#allocation1 + $0x8] sm:$0xff pattern:$0x73625140]  ;;  %v975_v5 = vld.sshfl [vmem:[#allocation1] sm:$0xff pattern:$0x73625140] }
 0x164   : > { %v611_v38 = vpop.permute.xlu1 %610 }
 0x165   : > { %v617_v43 = vsel %vm616_vm14, %v611_v38, %v2676_v57  ;;  %v2715_v46 = vpop.permute.xlu2 %691 }
 0x166   : > { %v621_v47 = vmul.f32 %v617_v43, %v603_v32 }
 0x168   : > { %v623_v50 = vadd.f32 %v621_v47, %v598_v27 }
 0x16a   : > { %888 = vrot.lane.b32.xlu1 %v885_v8, %s2324_s4  ;;  %v977_v8 = vld.sshfl [vmem:[#allocation1 + $0x10] sm:$0xff pattern:$0x73625140] }
 0x16b   : > { %905 = vperm.xlu2 %2050, %v2558_v45   ;;  %999 = vst [vmem:[#allocation1] ss:$4 sm:$0xff] %v993_v2 }
 0x16c   : > { %v615_v33 = vpop.permute.xlu1 %614 }
 0x16d   : > { %v618_v39 = vsel %vm616_vm14, %v2676_v57, %v615_v33  ;;  %v2728_v53 = vpop.permute.xlu2 %703  ;;  %v1082_v33 = vld [vmem:[#allocation4] sm:$0x3f]  ;;  %vm894_vm14 = vcmask 392192  }
 0x16e   : > { %v622_v59 = vmul.f32 %v618_v39, %v603_v32 }
 0x170   : > { %v624_v35 = vadd.f32 %v622_v59, %v599_v44 }
 0x172   : > { %892 = vrot.lane.b32.xlu1 %v2687_v9, %s2324_s4  ;;  %v653_v9 = vpop.permute.xlu0 %652  ;;  %v1001_v20 = vld.sshfl [vmem:[#allocation1 + $0x8] sm:$0xff pattern:$0x73625140]  ;;  %v1000_v13 = vld.sshfl [vmem:[#allocation1] sm:$0xff pattern:$0x73625140] }
 0x173   : > { %917 = vrot.lane.b32.xlu2 %v912_v61, %s2323_s28  ;;  %v1002_v61 = vld.sshfl [vmem:[#allocation1 + $0x10] sm:$0xff pattern:$0x73625140]  ;;  %1003 = vrot.lane.b32.xlu0 %v1000_v13, %s2330_s8  ;;  %s2362_s4 = smov 45  }
 0x174   : > { %v638_v63 = vpop.permute.xlu1 %637  ;;  %2052 = vset.pattern.permute.xlu2 %v2328_v10  ;;  %1024 = vst [vmem:[#allocation1] ss:$4 sm:$0xff] %v1018_v17 }
 0x175   : > { %v642_v57 = vsel %vm641_vm15, %v636_v62, %v638_v63  ;;  %v2735_v0 = vpop.permute.xlu2 %726  ;;  %v643_v18 = vsel %vm641_vm15, %v638_v63, %v2695_v16  ;;  %vm919_vm15 = vcmask 261120  }
 0x176   : > { %v646_v3 = vmul.f32 %v642_v57, %v2683_v1 }
 0x178   : > { %v648_v6 = vadd.f32 %v646_v3, %v623_v50  ;;  %v2335_v3 = vmov 4  }
 0x17a   : > { %915 = vrot.lane.b32.xlu1 %v2697_v23, %s2323_s28  ;;  %v647_v23 = vmul.f32 %v643_v18, %v2683_v1  ;;  %v700_v32 = vpop.permute.xlu0 %699  ;;  %v2331_v1 = vmov 45   ;;  %s2361_s28 = smov 110  }
 0x17b   : > { %940 = vrot.lane.b32.xlu2 %v936_v36, %s2329_s7  ;;  %2055 = vset.pattern.permute.xlu0 %v2331_v1  ;;  %v1026_v37 = vld.sshfl [vmem:[#allocation1 + $0x8] sm:$0xff pattern:$0x73625140]  ;;  %v1025_v38 = vld.sshfl [vmem:[#allocation1] sm:$0xff pattern:$0x73625140] }
 0x17c   : > { %v661_v11 = vpop.permute.xlu1 %660  ;;  %v649_v54 = vadd.f32 %v647_v23, %v624_v35  ;;  %1020 = vperm.xlu0 %2055, %v2558_v45   ;;  %v2760_v40 = vld.sshfl [vmem:[#allocation1 + $0x10] sm:$0xff pattern:$0x73625140] }
 0x17d   : > { %v667_v12 = vsel %vm666_vm0, %v661_v11, %v2702_v25  ;;  %v2742_v14 = vpop.permute.xlu2 %741 }
 0x17e   : > { %v671_v15 = vmul.f32 %v667_v12, %v653_v9 }
 0x180   : > { %v2746_v19 = vadd.f32 %v671_v15, %v648_v6 }
 0x182   : > { %938 = vrot.lane.b32.xlu1 %v2707_v29, %s2329_s7  ;;  %v717_v43 = vpop.permute.xlu0 %716 }
 0x183   : > { %955 = vperm.xlu2 %2052, %v2558_v45  }
 0x184   : > { %v665_v7 = vpop.permute.xlu1 %664 }
 0x185   : > { %v668_v24 = vsel %vm666_vm0, %v2702_v25, %v665_v7  ;;  %v754_v16 = vpop.permute.xlu2 %753  ;;  %v1057_v25 = vld [vmem:[#allocation4] sm:$0x3f]  ;;  %vm944_vm0 = vcmask 130048  }
 0x186   : > { %v672_v26 = vmul.f32 %v668_v24, %v653_v9  ;;  %1063 = vst [vmem:[#allocation1] ss:$4 sm:$0xff] %v1057_v25  ;;  %v1107_v9 = vld [vmem:[#allocation4] sm:$0x3f] }
 0x188   : > { %v2754_v27 = vadd.f32 %v672_v26, %v649_v54 }
 0x18a   : > { %942 = vrot.lane.b32.xlu1 %v2711_v42, %s2329_s7  ;;  %v750_v2 = vpop.permute.xlu0 %749  ;;  %s2363_s7 = smov 29  }
 0x18b   : > { %980 = vrot.lane.b32.xlu2 %v976_v4, %s2332_s20  ;;  %v2336_v4 = vmov 11  }
 0x18c   : > { %v702_v29 = vpop.permute.xlu1 %701  ;;  %2054 = vset.pattern.permute.xlu2 %v2333_v34  ;;  %2057 = vset.pattern.permute.xlu0 %v2336_v4  ;;  %v274_v4 = vand.u32 127, %v233_v31 }
 0x18d   : > { %v2758_v36 = vpop.permute.xlu2 %776  ;;  %v706_v42 = vsel %vm705_vm3, %v700_v32, %v702_v29  ;;  %v1065_v44 = vld.sshfl [vmem:[#allocation1 + $0x8] sm:$0xff pattern:$0x73625140]  ;;  %v1066_v59 = vld.sshfl [vmem:[#allocation1 + $0x10] sm:$0xff pattern:$0x73625140]  ;;  %v707_v57 = vsel %vm705_vm3, %v702_v29, %v2728_v53 }
 0x18e   : > { %v710_v52 = vmul.f32 %v706_v42, %v2715_v46  ;;  %v1064_v60 = vld.sshfl [vmem:[#allocation1] sm:$0xff pattern:$0x73625140]  ;;  %vm984_vm3 = vcmask 916480  }
 0x18f   : > { %1067 = vrot.lane.b32.xlu0 %v1064_v60, %s2334_s29  ;;  %1088 = vst [vmem:[#allocation1] ss:$4 sm:$0xff] %v1082_v33 }
 0x192   : > { %978 = vrot.lane.b32.xlu1 %v975_v5, %s2332_s20  ;;  %v2779_v5 = vld [vmem:[#allocation8] sm:$0x3] }
 0x193   : > { %995 = vperm.xlu2 %2054, %v2558_v45  }
 0x194   : > { %v725_v47 = vpop.permute.xlu1 %724 }
 0x195   : > { %v731_v49 = vsel %vm730_vm4, %v725_v47, %v2735_v0  ;;  %v2766_v50 = vpop.permute.xlu2 %791 }
 0x196   : > { %v735_v55 = vmul.f32 %v731_v49, %v717_v43  ;;  %v1090_v17 = vld.sshfl [vmem:[#allocation1 + $0x8] sm:$0xff pattern:$0x73625140]  ;;  %v1091_v23 = vld.sshfl [vmem:[#allocation1 + $0x10] sm:$0xff pattern:$0x73625140] }
 0x197   : > { %1084 = vperm.xlu0 %2057, %v2779_v5   ;;  %v2341_v49 = vmov 18  }
 0x198   : > { %v737_v39 = vadd.f32 %v735_v55, %v710_v52 }
 0x19a   : > { %982 = vrot.lane.b32.xlu1 %v977_v8, %s2332_s20  ;;  %s2368_s20 = smov 125  }
 0x19b   : > { %1007 = vrot.lane.b32.xlu2 %v1002_v61, %s2330_s8  ;;  %v1089_v61 = vld.sshfl [vmem:[#allocation1] sm:$0xff pattern:$0x73625140] }
 0x19c   : > { %v729_v45 = vpop.permute.xlu1 %728  ;;  %2056 = vset.pattern.permute.xlu2 %v2335_v3  ;;  %1113 = vst [vmem:[#allocation1] ss:$4 sm:$0xff] %v1107_v9  ;;  %v1182_v3 = vld [vmem:[#allocation4 + $0x2] sm:$0x3f]  ;;  %v275_v9 = vadd.s32 128, %v274_v4 }
 0x19d   : > { %v732_v35 = vsel %vm730_vm4, %v2735_v0, %v729_v45  ;;  %v2773_v62 = vpop.permute.xlu2 %803  ;;  %v711_v0 = vmul.f32 %v707_v57, %v2715_v46  ;;  %v767_v46 = vpop.permute.xlu0 %766  ;;  %vm1009_vm4 = vcmask 785408  }
 0x19e   : > { %v736_v63 = vmul.f32 %v732_v35, %v717_v43  ;;  %v1157_v43 = vld [vmem:[#allocation4 + $0x2] sm:$0x3f] }
 0x1a0   : > { %v738_v11 = vadd.f32 %v736_v63, %v711_v0 }
 0x1a2   : > { %1005 = vrot.lane.b32.xlu1 %v1001_v20, %s2330_s8  ;;  %s2365_s8 = smov 78  }
 0x1a3   : > { %1030 = vrot.lane.b32.xlu2 %v1026_v37, %s2337_s3  ;;  %v2793_v26 = vld.sshfl [vmem:[#allocation1 + $0x8] sm:$0xff pattern:$0x73625140]  ;;  %v1116_v32 = vld.sshfl [vmem:[#allocation1 + $0x10] sm:$0xff pattern:$0x73625140] }
 0x1a4   : > { %v752_v6 = vpop.permute.xlu1 %751  ;;  %v1114_v1 = vld.sshfl [vmem:[#allocation1] sm:$0xff pattern:$0x73625140] }
 0x1a5   : > { %v757_v8 = vsel %vm755_vm5, %v752_v6, %v754_v16  ;;  %v756_v53 = vsel %vm755_vm5, %v750_v2, %v752_v6  ;;  %v2783_v10 = vpop.permute.xlu2 %826  ;;  %1117 = vrot.lane.b32.xlu0 %v1114_v1, %s2338_s6  ;;  %v800_v42 = vpop.permute.xlu0 %799 }
 0x1a6   : > { %v761_v12 = vmul.f32 %v757_v8, %v2742_v14  ;;  %v760_v15 = vmul.f32 %v756_v53, %v2742_v14  ;;  %v1132_v14 = vld [vmem:[#allocation4 + $0x2] sm:$0x3f] }
 0x1a7   : > { %1138 = vst [vmem:[#allocation1] ss:$4 sm:$0xff] %v1132_v14 }
 0x1a8   : > { %v763_v18 = vadd.f32 %v761_v12, %v738_v11  ;;  %v762_v20 = vadd.f32 %v760_v15, %v737_v39 }
 0x1aa   : > { %1028 = vrot.lane.b32.xlu1 %v1025_v38, %s2337_s3 }
 0x1ab   : > { %1059 = vperm.xlu2 %2056, %v2779_v5  }
 0x1ac   : > { %v775_v13 = vpop.permute.xlu1 %774 }
 0x1ad   : > { %v781_v7 = vsel %vm780_vm6, %v775_v13, %v2758_v36  ;;  %v2791_v24 = vpop.permute.xlu2 %841  ;;  %v817_v63 = vpop.permute.xlu0 %816  ;;  %v2344_v13 = vmov 39  }
 0x1ae   : > { %v785_v16 = vmul.f32 %v781_v7, %v767_v46  ;;  %v1140_v52 = vld.sshfl [vmem:[#allocation1 + $0x8] sm:$0xff pattern:$0x73625140]  ;;  %v2813_v60 = vld.sshfl [vmem:[#allocation1 + $0x10] sm:$0xff pattern:$0x73625140] }
 0x1b0   : > { %v787_v54 = vadd.f32 %v785_v16, %v762_v20  ;;  %v2838_v20 = vand.u32 15, %v274_v4 }
 0x1b2   : > { %1032 = vrot.lane.b32.xlu1 %v2760_v40, %s2337_s3  ;;  %v2340_v40 = vmov 25   ;;  %vm300_vm11 = vcmp.ge.s32.totalorder %v2838_v20, 3  ;;  %vm679_vm13 = vcmp.ge.s32.totalorder %v2838_v20, 1  ;;  %vm490_vm5 = vcmp.ge.s32.totalorder %v2838_v20, 2  ;;  %s2372_s3 = smov 93  }
 0x1b3   : > { %1071 = vrot.lane.b32.xlu2 %v1066_v59, %s2334_s29  ;;  %2059 = vset.pattern.permute.xlu0 %v2340_v40  ;;  %v2811_v59 = vld.sshfl [vmem:[#allocation1] sm:$0xff pattern:$0x73625140] }
 0x1b4   : > { %v779_v29 = vpop.permute.xlu1 %778  ;;  %2058 = vset.pattern.permute.xlu2 %v2341_v49  ;;  %1134 = vperm.xlu0 %2059, %v2779_v5   ;;  %1163 = vst [vmem:[#allocation1] ss:$4 sm:$0xff] %v1157_v43 }
 0x1b5   : > { %v782_v34 = vsel %vm780_vm6, %v2758_v36, %v779_v29  ;;  %v2801_v25 = vpop.permute.xlu2 %853  ;;  %v1798_v29 = vsel %vm679_vm13, 1.0, %v2280_v48  ;;  %vm1034_vm6 = vcmask 654336   ;;  %vm1198_vm13 = vcmask 777216  }
 0x1b6   : > { %v786_v37 = vmul.f32 %v782_v34, %v767_v46  ;;  %v2343_v46 = vmov 32   ;;  %v1207_v34 = vld [vmem:[#allocation4 + $0x2] sm:$0x3f] }
 0x1b8   : > { %v788_v38 = vadd.f32 %v786_v37, %v763_v18  ;;  %v479_v18 = vsel %vm477_vm9, %v2653_v21, %v2626_v51 }
 0x1b9   : > { %v483_v7 = vmul.f32 %v479_v18, %v2615_v30 }
 0x1ba   : > { %1069 = vrot.lane.b32.xlu1 %v1065_v44, %s2334_s29  ;;  %s2370_s29 = smov 13  }
 0x1bb   : > { %1094 = vrot.lane.b32.xlu2 %v1090_v17, %s2339_s21  ;;  %v2822_v6 = vld.sshfl [vmem:[#allocation1 + $0x8] sm:$0xff pattern:$0x73625140]  ;;  %v2824_v8 = vld.sshfl [vmem:[#allocation1 + $0x10] sm:$0xff pattern:$0x73625140]  ;;  %v485_v16 = vadd.f32 %v483_v7, %v2649_v22 }
 0x1bc   : > { %v802_v47 = vpop.permute.xlu1 %801  ;;  %v1164_v53 = vld.sshfl [vmem:[#allocation1] sm:$0xff pattern:$0x73625140]  ;;  %v2833_v17 = vand.u32 15, %v275_v9  ;;  %2061 = vset.pattern.permute.xlu0 %v2344_v13 }
 0x1bd   : > { %v807_v36 = vsel %vm805_vm7, %v802_v47, %v2773_v62  ;;  %v806_v55 = vsel %vm805_vm7, %v800_v42, %v802_v47  ;;  %v2807_v33 = vpop.permute.xlu2 %890  ;;  %1167 = vrot.lane.b32.xlu0 %v1164_v53, %s2342_s25  ;;  %1188 = vst [vmem:[#allocation1] ss:$4 sm:$0xff] %v1182_v3 }
 0x1be   : > { %v811_v39 = vmul.f32 %v807_v36, %v2766_v50  ;;  %v810_v44 = vmul.f32 %v806_v55, %v2766_v50  ;;  %vm301_vm9 = vcmp.ge.s32.totalorder %v2833_v17, 3  ;;  %vm680_vm12 = vcmp.ge.s32.totalorder %v2833_v17, 1 }
 0x1bf   : > { %v1799_v1 = vsel %vm680_vm12, 1.0, %v2280_v48  ;;  %vm491_vm7 = vcmp.ge.s32.totalorder %v2833_v17, 2  ;;  %vm1173_vm12 = vcmask 908288  }
 0x1c0   : > { %v813_v45 = vadd.f32 %v811_v39, %v788_v38  ;;  %v812_v35 = vadd.f32 %v810_v44, %v787_v54 }
 0x1c2   : > { %1092 = vrot.lane.b32.xlu1 %v1089_v61, %s2339_s21 }
 0x1c3   : > { %1109 = vperm.xlu2 %2058, %v2779_v5  }
 0x1c4   : > { %v825_v62 = vpop.permute.xlu1 %824  ;;  %v1190_v38 = vld.sshfl [vmem:[#allocation1 + $0x8] sm:$0xff pattern:$0x73625140]  ;;  %v1191_v47 = vld.sshfl [vmem:[#allocation1 + $0x10] sm:$0xff pattern:$0x73625140] }
 0x1c5   : > { %v831_v57 = vsel %vm830_vm8, %v825_v62, %v2783_v10  ;;  %v2819_v2 = vpop.permute.xlu2 %905  ;;  %1184 = vperm.xlu0 %2061, %v2779_v5  }
 0x1c6   : > { %v835_v50 = vmul.f32 %v831_v57, %v817_v63 }
 0x1c8   : > { %v837_v0 = vadd.f32 %v835_v50, %v812_v35 }
 0x1ca   : > { %1096 = vrot.lane.b32.xlu1 %v1091_v23, %s2339_s21  ;;  %v850_v23 = vpop.permute.xlu0 %849  ;;  %s2376_s21 = smov 77  }
 0x1cb   : > { %1121 = vrot.lane.b32.xlu2 %v1116_v32, %s2338_s6  ;;  %v1794_v32 = vsel %vm300_vm11, 1.0, %v2280_v48  ;;  %vm1148_vm11 = vcmask 1039360  }
 0x1cc   : > { %v829_v11 = vpop.permute.xlu1 %828  ;;  %2060 = vset.pattern.permute.xlu2 %v2343_v46  ;;  %v486_v22 = vmul.f32 %v1794_v32, %v2660_v28 }
 0x1cd   : > { %v832_v12 = vsel %vm830_vm8, %v2783_v10, %v829_v11  ;;  %v2831_v31 = vpop.permute.xlu2 %917  ;;  %v1271_v11 = vld [vmem:[#allocation4] sm:$0x3f]  ;;  %vm1073_vm8 = vcmask 384000  }
 0x1ce   : > { %v836_v15 = vmul.f32 %v832_v12, %v817_v63 }
 0x1d0   : > { %v838_v61 = vadd.f32 %v836_v15, %v813_v45  ;;  %v1246_v45 = vld [vmem:[#allocation4] sm:$0x3f] }
 0x1d2   : > { %1119 = vrot.lane.b32.xlu1 %v2793_v26, %s2338_s6  ;;  %v1795_v26 = vsel %vm301_vm9, 1.0, %v2280_v48  ;;  %v881_v49 = vpop.permute.xlu0 %880  ;;  %vm1123_vm9 = vcmask 121856   ;;  %s2374_s6 = smov 109  }
 0x1d3   : > { %1144 = vrot.lane.b32.xlu2 %v1140_v52, %s2345_s30  ;;  %v487_v42 = vmul.f32 %v1795_v26, %v485_v16 }
 0x1d4   : > { %v852_v51 = vpop.permute.xlu1 %851 }
 0x1d5   : > { %v857_v30 = vsel %vm855_vm10, %v852_v51, %v2801_v25  ;;  %v856_v21 = vsel %vm855_vm10, %v850_v23, %v852_v51  ;;  %v2850_v10 = vpop.permute.xlu2 %940  ;;  %vm1098_vm10 = vcmask 252928  }
 0x1d6   : > { %v861_v14 = vmul.f32 %v857_v30, %v2791_v24  ;;  %v860_v54 = vmul.f32 %v856_v21, %v2791_v24  ;;  %v1189_v24 = vld.sshfl [vmem:[#allocation1] sm:$0xff pattern:$0x73625140] }
 0x1d7   : > { %1213 = vst [vmem:[#allocation1] ss:$4 sm:$0xff] %v1207_v34 }
 0x1d8   : > { %v863_v37 = vadd.f32 %v861_v14, %v838_v61  ;;  %v862_v25 = vadd.f32 %v860_v54, %v837_v0  ;;  %v2347_v0 = vmov 46  }
 0x1da   : > { %v865_v40 = vmul.f32 %v1799_v1, %v863_v37  ;;  %v864_v43 = vmul.f32 %v1798_v29, %v862_v25  ;;  %1142 = vrot.lane.b32.xlu1 %v2811_v59, %s2345_s30  ;;  %v914_v4 = vpop.permute.xlu0 %913 }
 0x1db   : > { %1159 = vperm.xlu2 %2060, %v2779_v5  }
 0x1dc   : > { %v2863_v52 = vadd.f32 %v865_v40, %v487_v42  ;;  %v2865_v36 = vadd.f32 %v864_v43, %v486_v22  ;;  %v889_v55 = vpop.permute.xlu1 %888  ;;  %v2352_v22 = vmov 19   ;;  %v2353_v43 = vmov 12  }
 0x1dd   : > { %v895_v39 = vsel %vm894_vm14, %v889_v55, %v2807_v33  ;;  %v956_v28 = vpop.permute.xlu2 %955 }
 0x1de   : > { %v899_v44 = vmul.f32 %v895_v39, %v881_v49  ;;  %v1215_v59 = vld.sshfl [vmem:[#allocation1 + $0x8] sm:$0xff pattern:$0x73625140]  ;;  %v1216_v35 = vld.sshfl [vmem:[#allocation1 + $0x10] sm:$0xff pattern:$0x73625140]  ;;  %v964_v21 = vmul.f32 %v2722_v56, %v956_v28  ;;  %v965_v56 = vmul.f32 %v2724_v58, %v956_v28 }
 0x1df   : > { %v1214_v63 = vld.sshfl [vmem:[#allocation1] sm:$0xff pattern:$0x73625140] }
 0x1e0   : > { %1217 = vrot.lane.b32.xlu0 %v1214_v63, %s2346_s1  ;;  %1252 = vst [vmem:[#allocation1] ss:$4 sm:$0xff] %v1246_v45 }
 0x1e2   : > { %1146 = vrot.lane.b32.xlu1 %v2813_v60, %s2345_s30  ;;  %v2348_v60 = vmov 5   ;;  %v931_v13 = vpop.permute.xlu0 %930 }
 0x1e3   : > { %1171 = vrot.lane.b32.xlu2 %v2824_v8, %s2342_s25  ;;  %2063 = vset.pattern.permute.xlu0 %v2348_v60 }
 0x1e4   : > { %v893_v62 = vpop.permute.xlu1 %892  ;;  %2062 = vset.pattern.permute.xlu2 %v2347_v0 }
 0x1e5   : > { %v896_v57 = vsel %vm894_vm14, %v2807_v33, %v893_v62  ;;  %v2876_v50 = vpop.permute.xlu2 %980  ;;  %v1346_v62 = vld [vmem:[#allocation4 + $0x2] sm:$0x3f]  ;;  %vm1223_vm14 = vcmask 646144  }
 0x1e6   : > { %v900_v3 = vmul.f32 %v896_v57, %v881_v49 }
 0x1e7   : > { %v1254_v18 = vld.sshfl [vmem:[#allocation1 + $0x8] sm:$0xff pattern:$0x73625140]  ;;  %v1255_v46 = vld.sshfl [vmem:[#allocation1 + $0x10] sm:$0xff pattern:$0x73625140] }
 0x1e8   : > { %1248 = vperm.xlu0 %2063, %v2779_v5  }
 0x1ea   : > { %1169 = vrot.lane.b32.xlu1 %v2822_v6, %s2342_s25  ;;  %v1253_v6 = vld.sshfl [vmem:[#allocation1] sm:$0xff pattern:$0x73625140]  ;;  %v971_v42 = vpop.permute.xlu0 %970 }
 0x1eb   : > { %1194 = vrot.lane.b32.xlu2 %v1190_v38, %s2349_s22  ;;  %1277 = vst [vmem:[#allocation1] ss:$4 sm:$0xff] %v1271_v11 }
 0x1ec   : > { %v916_v8 = vpop.permute.xlu1 %915 }
 0x1ed   : > { %v921_v53 = vsel %vm919_vm15, %v916_v8, %v2831_v31  ;;  %v920_v33 = vsel %vm919_vm15, %v914_v4, %v916_v8  ;;  %v2882_v9 = vpop.permute.xlu2 %995  ;;  %vm1050_vm15 = vcmp.lt.s32.totalorder %v2833_v17, 15 }
 0x1ee   : > { %v925_v12 = vmul.f32 %v921_v53, %v2819_v2  ;;  %v924_v15 = vmul.f32 %v920_v33, %v2819_v2  ;;  %v1296_v2 = vld [vmem:[#allocation4] sm:$0x3f] }
 0x1f0   : > { %v927_v61 = vadd.f32 %v925_v12, %v900_v3  ;;  %v926_v23 = vadd.f32 %v924_v15, %v899_v44  ;;  %2065 = vset.pattern.permute.xlu0 %v2352_v22 }
 0x1f2   : > { %1192 = vrot.lane.b32.xlu1 %v1189_v24, %s2349_s22  ;;  %v2890_v14 = vld.sshfl [vmem:[#allocation1 + $0x8] sm:$0xff pattern:$0x73625140]  ;;  %v1280_v54 = vld.sshfl [vmem:[#allocation1 + $0x10] sm:$0xff pattern:$0x73625140]  ;;  %v1004_v57 = vpop.permute.xlu0 %1003 }
 0x1f3   : > { %1209 = vperm.xlu2 %2062, %v2779_v5   ;;  %v1278_v32 = vld.sshfl [vmem:[#allocation1] sm:$0xff pattern:$0x73625140] }
 0x1f4   : > { %v939_v31 = vpop.permute.xlu1 %938  ;;  %1281 = vrot.lane.b32.xlu0 %v1278_v32, %s2350_s24  ;;  %1302 = vst [vmem:[#allocation1] ss:$4 sm:$0xff] %v1296_v2 }
 0x1f5   : > { %v945_v7 = vsel %vm944_vm0, %v939_v31, %v2850_v10  ;;  %v1008_v51 = vpop.permute.xlu2 %1007 }
 0x1f6   : > { %v949_v30 = vmul.f32 %v945_v7, %v931_v13  ;;  %v1796_v7 = vsel %vm490_vm5, 1.0, %v2280_v48  ;;  %vm1312_vm5 = vcmask 113664  }
 0x1f7   : > { %v675_v2 = vmul.f32 %v1796_v7, %v2746_v19 }
 0x1f8   : > { %v951_v16 = vadd.f32 %v949_v30, %v926_v23  ;;  %v1371_v23 = vld [vmem:[#allocation4 + $0x2] sm:$0x3f] }
 0x1fa   : > { %v966_v26 = vadd.f32 %v964_v21, %v951_v16  ;;  %1196 = vrot.lane.b32.xlu1 %v1191_v47, %s2349_s22  ;;  %v1321_v47 = vld [vmem:[#allocation4 + $0x2] sm:$0x3f] }
 0x1fb   : > { %1221 = vrot.lane.b32.xlu2 %v1216_v35, %s2346_s1  ;;  %v1304_v55 = vld.sshfl [vmem:[#allocation1 + $0x8] sm:$0xff pattern:$0x73625140]  ;;  %v1303_v39 = vld.sshfl [vmem:[#allocation1] sm:$0xff pattern:$0x73625140] }
 0x1fc   : > { %v943_v1 = vpop.permute.xlu1 %942  ;;  %2064 = vset.pattern.permute.xlu2 %v2353_v43  ;;  %1298 = vperm.xlu0 %2065, %v2779_v5   ;;  %v2905_v28 = vld.sshfl [vmem:[#allocation1 + $0x10] sm:$0xff pattern:$0x73625140] }
 0x1fd   : > { %v946_v29 = vsel %vm944_vm0, %v2850_v10, %v943_v1  ;;  %v2896_v34 = vpop.permute.xlu2 %1030  ;;  %1327 = vst [vmem:[#allocation1] ss:$4 sm:$0xff] %v1321_v47  ;;  %vm1049_vm0 = vcmp.lt.s32.totalorder %v2838_v20, 15 }
 0x1fe   : > { %v950_v37 = vmul.f32 %v946_v29, %v931_v13  ;;  %v1797_v29 = vsel %vm491_vm7, 1.0, %v2280_v48  ;;  %vm1362_vm7 = vcmask 900096  }
 0x200   : > { %v952_v25 = vadd.f32 %v950_v37, %v927_v61  ;;  %v2356_v61 = vmov 26  }
 0x202   : > { %1219 = vrot.lane.b32.xlu1 %v1215_v59, %s2346_s1  ;;  %v967_v38 = vadd.f32 %v965_v56, %v952_v25 }
 0x203   : > { %1258 = vrot.lane.b32.xlu2 %v1254_v18, %s2351_s19  ;;  %v2355_v18 = vmov 33  }
 0x204   : > { %v979_v40 = vpop.permute.xlu1 %978  ;;  %v2912_v3 = vld.sshfl [vmem:[#allocation1 + $0x8] sm:$0xff pattern:$0x73625140]  ;;  %v1330_v4 = vld.sshfl [vmem:[#allocation1 + $0x10] sm:$0xff pattern:$0x73625140]  ;;  %2067 = vset.pattern.permute.xlu0 %v2355_v18 }
 0x205   : > { %v985_v10 = vsel %vm984_vm3, %v979_v40, %v2876_v50  ;;  %v2903_v58 = vpop.permute.xlu2 %1059  ;;  %v1328_v0 = vld.sshfl [vmem:[#allocation1] sm:$0xff pattern:$0x73625140]  ;;  %v2359_v40 = vmov 47  }
 0x206   : > { %v989_v24 = vmul.f32 %v985_v10, %v971_v42  ;;  %1331 = vrot.lane.b32.xlu0 %v1328_v0, %s2354_s15  ;;  %1352 = vst [vmem:[#allocation1] ss:$4 sm:$0xff] %v1346_v62 }
 0x208   : > { %v991_v49 = vadd.f32 %v989_v24, %v966_v26 }
 0x20a   : > { %1256 = vrot.lane.b32.xlu1 %v1253_v6, %s2351_s19  ;;  %v1021_v6 = vpop.permute.xlu0 %1020 }
 0x20b   : > { %1273 = vperm.xlu2 %2064, %v2779_v5  }
 0x20c   : > { %v983_v44 = vpop.permute.xlu1 %982 }
 0x20d   : > { %v986_v45 = vsel %vm984_vm3, %v2876_v50, %v983_v44  ;;  %v2910_v59 = vpop.permute.xlu2 %1071  ;;  %v2927_v31 = vld.sshfl [vmem:[#allocation1 + $0x10] sm:$0xff pattern:$0x73625140]  ;;  %vm1262_vm3 = vcmask 375808  }
 0x20e   : > { %v990_v35 = vmul.f32 %v986_v45, %v971_v42  ;;  %1348 = vperm.xlu0 %2067, %v2779_v5   ;;  %v2360_v45 = vmov 40  }
 0x210   : > { %v992_v63 = vadd.f32 %v990_v35, %v967_v38  ;;  %v676_v38 = vmul.f32 %v1797_v29, %v2754_v27  ;;  %v2366_v29 = vmov 20  }
 0x212   : > { %1260 = vrot.lane.b32.xlu1 %v1255_v46, %s2351_s19  ;;  %v2924_v46 = vld.sshfl [vmem:[#allocation1] sm:$0xff pattern:$0x73625140]  ;;  %v1068_v22 = vpop.permute.xlu0 %1067 }
 0x213   : > { %1285 = vrot.lane.b32.xlu2 %v1280_v54, %s2350_s24  ;;  %v1396_v54 = vld [vmem:[#allocation4 + $0x2] sm:$0x3f] }
 0x214   : > { %v1006_v60 = vpop.permute.xlu1 %1005  ;;  %2066 = vset.pattern.permute.xlu2 %v2356_v61 }
 0x215   : > { %v1011_v50 = vsel %vm1009_vm4, %v1006_v60, %v1008_v51  ;;  %v1010_v8 = vsel %vm1009_vm4, %v1004_v57, %v1006_v60  ;;  %v2916_v53 = vpop.permute.xlu2 %1094  ;;  %vm1287_vm4 = vcmask 244736  }
 0x216   : > { %v1015_v33 = vmul.f32 %v1011_v50, %v2882_v9  ;;  %v1014_v11 = vmul.f32 %v1010_v8, %v2882_v9  ;;  %v1354_v9 = vld.sshfl [vmem:[#allocation1 + $0x8] sm:$0xff pattern:$0x73625140]  ;;  %2069 = vset.pattern.permute.xlu0 %v2359_v40 }
 0x217   : > { %1377 = vst [vmem:[#allocation1] ss:$4 sm:$0xff] %v1371_v23 }
 0x218   : > { %v1017_v12 = vadd.f32 %v1015_v33, %v992_v63  ;;  %v1016_v15 = vadd.f32 %v1014_v11, %v991_v49  ;;  %v1460_v63 = vld [vmem:[#allocation4] sm:$0x3f] }
 0x21a   : > { %1283 = vrot.lane.b32.xlu1 %v2890_v14, %s2350_s24 }
 0x21b   : > { %1308 = vrot.lane.b32.xlu2 %v1304_v55, %s2357_s23 }
 0x21c   : > { %v1029_v13 = vpop.permute.xlu1 %1028 }
 0x21d   : > { %v1035_v51 = vsel %vm1034_vm6, %v1029_v13, %v2896_v34  ;;  %v2932_v30 = vpop.permute.xlu2 %1109 }
 0x21e   : > { %v1039_v21 = vmul.f32 %v1035_v51, %v1021_v6  ;;  %v1378_v32 = vld.sshfl [vmem:[#allocation1] sm:$0xff pattern:$0x73625140]  ;;  %v1380_v1 = vld.sshfl [vmem:[#allocation1 + $0x10] sm:$0xff pattern:$0x73625140] }
 0x21f   : > { %1381 = vrot.lane.b32.xlu0 %v1378_v32, %s2358_s26  ;;  %v2944_v19 = vld.sshfl [vmem:[#allocation1 + $0x8] sm:$0xff pattern:$0x73625140] }
 0x220   : > { %v1041_v16 = vadd.f32 %v1039_v21, %v1016_v15  ;;  %1402 = vst [vmem:[#allocation1] ss:$4 sm:$0xff] %v1396_v54 }
 0x222   : > { %v2936_v14 = vadd.f32 %v1041_v16, %v675_v2  ;;  %1306 = vrot.lane.b32.xlu1 %v1303_v39, %s2357_s23 }
 0x223   : > { %1323 = vperm.xlu2 %2066, %v2779_v5  }
 0x224   : > { %v1033_v26 = vpop.permute.xlu1 %1032 }
 0x225   : > { %v1036_v56 = vsel %vm1034_vm6, %v2896_v34, %v1033_v26  ;;  %v1122_v37 = vpop.permute.xlu2 %1121  ;;  %v1435_v34 = vld [vmem:[#allocation4] sm:$0x3f]  ;;  %vm1337_vm6 = vcmask 1031168  }
 0x226   : > { %v1040_v25 = vmul.f32 %v1036_v56, %v1021_v6  ;;  %v1510_v56 = vld [vmem:[#allocation4 + $0x2] sm:$0x3f] }
 0x227   : > { %1398 = vperm.xlu0 %2069, %v2779_v5   ;;  %v2956_v27 = vld.sshfl [vmem:[#allocation1] sm:$0xff pattern:$0x73625140]  ;;  %v1404_v55 = vld.sshfl [vmem:[#allocation1 + $0x8] sm:$0xff pattern:$0x73625140] }
 0x228   : > { %v1042_v42 = vadd.f32 %v1040_v25, %v1017_v12 }
 0x22a   : > { %v2947_v43 = vadd.f32 %v1042_v42, %v676_v38  ;;  %1310 = vrot.lane.b32.xlu1 %v2905_v28, %s2357_s23  ;;  %v2960_v28 = vld.sshfl [vmem:[#allocation1 + $0x10] sm:$0xff pattern:$0x73625140] }
 0x22b   : > { %1335 = vrot.lane.b32.xlu2 %v1330_v4, %s2354_s15  ;;  %1441 = vst [vmem:[#allocation1] ss:$4 sm:$0xff] %v1435_v34 }
 0x22c   : > { %v1070_v10 = vpop.permute.xlu1 %1069  ;;  %2068 = vset.pattern.permute.xlu2 %v2360_v45 }
 0x22d   : > { %v1075_v24 = vsel %vm1073_vm8, %v1070_v10, %v2910_v59  ;;  %v1074_v47 = vsel %vm1073_vm8, %v1068_v22, %v1070_v10  ;;  %v2953_v49 = vpop.permute.xlu2 %1144  ;;  %v1085_v59 = vpop.permute.xlu0 %1084  ;;  %vm1387_vm8 = vcmask 769024  }
 0x22e   : > { %v1079_v39 = vmul.f32 %v1075_v24, %v2903_v58  ;;  %v1078_v44 = vmul.f32 %v1074_v47, %v2903_v58  ;;  %v1535_v24 = vld [vmem:[#allocation4 + $0x2] sm:$0x3f] }
 0x22f   : > { %2072 = vset.pattern.permute.xlu0 %v2366_v29 }
 0x232   : > { %1333 = vrot.lane.b32.xlu1 %v2912_v3, %s2354_s15  ;;  %v1442_v4 = vld.sshfl [vmem:[#allocation1] sm:$0xff pattern:$0x73625140]  ;;  %v2968_v0 = vld.sshfl [vmem:[#allocation1 + $0x8] sm:$0xff pattern:$0x73625140] }
 0x233   : > { %1358 = vrot.lane.b32.xlu2 %v1354_v9, %s2361_s28  ;;  %v1444_v60 = vld.sshfl [vmem:[#allocation1 + $0x10] sm:$0xff pattern:$0x73625140]  ;;  %1445 = vrot.lane.b32.xlu0 %v1442_v4, %s2362_s4 }
 0x234   : > { %v1093_v35 = vpop.permute.xlu1 %1092  ;;  %1466 = vst [vmem:[#allocation1] ss:$4 sm:$0xff] %v1460_v63 }
 0x235   : > { %v1099_v62 = vsel %vm1098_vm10, %v1093_v35, %v2916_v53  ;;  %v2966_v57 = vpop.permute.xlu2 %1159  ;;  %v1118_v18 = vpop.permute.xlu0 %1117 }
 0x236   : > { %v1103_v58 = vmul.f32 %v1099_v62, %v1085_v59 }
 0x238   : > { %v1105_v3 = vadd.f32 %v1103_v58, %v1078_v44 }
 0x23a   : > { %1356 = vrot.lane.b32.xlu1 %v2924_v46, %s2361_s28 }
 0x23b   : > { %1373 = vperm.xlu2 %2068, %v2779_v5   ;;  %v1468_v12 = vld.sshfl [vmem:[#allocation1 + $0x8] sm:$0xff pattern:$0x73625140]  ;;  %v1467_v9 = vld.sshfl [vmem:[#allocation1] sm:$0xff pattern:$0x73625140] }
 0x23c   : > { %v1097_v50 = vpop.permute.xlu1 %1096  ;;  %1472 = vrot.lane.b32.xlu0 %v1468_v12, %s2363_s7  ;;  %v1469_v2 = vld.sshfl [vmem:[#allocation1 + $0x10] sm:$0xff pattern:$0x73625140] }
 0x23d   : > { %v1100_v8 = vsel %vm1098_vm10, %v2916_v53, %v1097_v50  ;;  %v1172_v33 = vpop.permute.xlu2 %1171  ;;  %v1485_v53 = vld [vmem:[#allocation4] sm:$0x3f]  ;;  %v1135_v16 = vpop.permute.xlu0 %1134  ;;  %vm1412_vm10 = vcmask 637952  }
 0x23e   : > { %v1104_v11 = vmul.f32 %v1100_v8, %v1085_v59  ;;  %1491 = vst [vmem:[#allocation1] ss:$4 sm:$0xff] %v1485_v53 }
 0x240   : > { %v1106_v15 = vadd.f32 %v1104_v11, %v1079_v39 }
 0x242   : > { %1360 = vrot.lane.b32.xlu1 %v2927_v31, %s2361_s28  ;;  %v2364_v31 = vmov 6  }
 0x243   : > { %1385 = vrot.lane.b32.xlu2 %v1380_v1, %s2358_s26 }
 0x244   : > { %v1120_v61 = vpop.permute.xlu1 %1119  ;;  %1470 = vrot.lane.b32.xlu0 %v1467_v9, %s2363_s7  ;;  %2070 = vset.pattern.permute.xlu2 %v2364_v31 }
 0x245   : > { %v1125_v23 = vsel %vm1123_vm9, %v1120_v61, %v1122_v37  ;;  %v1124_v6 = vsel %vm1123_vm9, %v1118_v18, %v1120_v61  ;;  %v2978_v46 = vpop.permute.xlu2 %1194  ;;  %v1494_v37 = vld.sshfl [vmem:[#allocation1 + $0x10] sm:$0xff pattern:$0x73625140]  ;;  %v1493_v25 = vld.sshfl [vmem:[#allocation1 + $0x8] sm:$0xff pattern:$0x73625140]  ;;  %v1168_v10 = vpop.permute.xlu0 %1167 }
 0x246   : > { %v1129_v13 = vmul.f32 %v1125_v23, %v2932_v30  ;;  %v1128_v7 = vmul.f32 %v1124_v6, %v2932_v30  ;;  %v2992_v38 = vld.sshfl [vmem:[#allocation1] sm:$0xff pattern:$0x73625140]  ;;  %vm1238_vm9 = vcmp.lt.s32.totalorder %v2838_v20, 14 }
 0x247   : > { %1516 = vst [vmem:[#allocation1] ss:$4 sm:$0xff] %v1510_v56 }
 0x248   : > { %v1131_v51 = vadd.f32 %v1129_v13, %v1106_v15  ;;  %v1130_v21 = vadd.f32 %v1128_v7, %v1105_v3 }
 0x24a   : > { %1383 = vrot.lane.b32.xlu1 %v2944_v19, %s2358_s26 }
 0x24b   : > { %1408 = vrot.lane.b32.xlu2 %v1404_v55, %s2365_s8 }
 0x24c   : > { %v1143_v54 = vpop.permute.xlu1 %1142  ;;  %1487 = vperm.xlu0 %2072, %v2779_v5  }
 0x24d   : > { %v1149_v26 = vsel %vm1148_vm11, %v1143_v54, %v2953_v49  ;;  %v2987_v30 = vpop.permute.xlu2 %1209  ;;  %v1185_v58 = vpop.permute.xlu0 %1184 }
 0x24e   : > { %v1153_v32 = vmul.f32 %v1149_v26, %v1135_v16  ;;  %v1517_v55 = vld.sshfl [vmem:[#allocation1] sm:$0xff pattern:$0x73625140]  ;;  %v3003_v35 = vld.sshfl [vmem:[#allocation1 + $0x10] sm:$0xff pattern:$0x73625140] }
 0x24f   : > { %v1801_v26 = vsel %vm1050_vm15, 1.0, %v2280_v48  ;;  %vm1526_vm15 = vcmask 1022976  }
 0x250   : > { %v1155_v1 = vadd.f32 %v1153_v32, %v1130_v21  ;;  %v1585_v21 = vld [vmem:[#allocation4 + $0x2] sm:$0x3f]  ;;  %v1800_v32 = vsel %vm1049_vm0, 1.0, %v2280_v48  ;;  %vm1551_vm0 = vcmask 891904  }
 0x252   : > { %1406 = vrot.lane.b32.xlu1 %v2956_v27, %s2365_s8  ;;  %v2367_v27 = vmov 13  }
 0x253   : > { %1437 = vperm.xlu2 %2070, %v2779_v5  }
 0x254   : > { %v1147_v19 = vpop.permute.xlu1 %1146  ;;  %1520 = vrot.lane.b32.xlu0 %v1517_v55, %s2368_s20 }
 0x255   : > { %v1150_v42 = vsel %vm1148_vm11, %v2953_v49, %v1147_v19  ;;  %v1222_v22 = vpop.permute.xlu2 %1221  ;;  %v1518_v49 = vld.sshfl [vmem:[#allocation1 + $0x8] sm:$0xff pattern:$0x73625140]  ;;  %v1218_v9 = vpop.permute.xlu0 %1217  ;;  %vm1239_vm11 = vcmp.lt.s32.totalorder %v2833_v17, 14 }
 0x256   : > { %v1154_v40 = vmul.f32 %v1150_v42, %v1135_v16  ;;  %1541 = vst [vmem:[#allocation1] ss:$4 sm:$0xff] %v1535_v24  ;;  %v2373_v24 = vmov 48  }
 0x258   : > { %v1156_v34 = vadd.f32 %v1154_v40, %v1131_v51  ;;  %v2371_v51 = vmov 27  }
 0x25a   : > { %1410 = vrot.lane.b32.xlu1 %v2960_v28, %s2365_s8 }
 0x25b   : > { %1449 = vrot.lane.b32.xlu2 %v1444_v60, %s2362_s4 }
 0x25c   : > { %v1170_v47 = vpop.permute.xlu1 %1169  ;;  %2071 = vset.pattern.permute.xlu2 %v2367_v27 }
 0x25d   : > { %v1175_v39 = vsel %vm1173_vm12, %v1170_v47, %v1172_v33  ;;  %v1174_v44 = vsel %vm1173_vm12, %v1168_v10, %v1170_v47  ;;  %v2998_v45 = vpop.permute.xlu2 %1258  ;;  %v1560_v33 = vld [vmem:[#allocation4 + $0x2] sm:$0x3f]  ;;  %v3015_v15 = vld.sshfl [vmem:[#allocation1] sm:$0xff pattern:$0x73625140]  ;;  %vm1451_vm12 = vcmask 367616  }
 0x25e   : > { %v1179_v59 = vmul.f32 %v1175_v39, %v2966_v57  ;;  %v1178_v28 = vmul.f32 %v1174_v44, %v2966_v57  ;;  %v2369_v57 = vmov 34   ;;  %v1543_v12 = vld.sshfl [vmem:[#allocation1 + $0x8] sm:$0xff pattern:$0x73625140] }
 0x25f   : > { %2074 = vset.pattern.permute.xlu0 %v2369_v57 }
 0x260   : > { %v1181_v63 = vadd.f32 %v1179_v59, %v1156_v34  ;;  %v1180_v62 = vadd.f32 %v1178_v28, %v1155_v1  ;;  %1537 = vperm.xlu0 %2074, %v2779_v5  }
 0x262   : > { %1447 = vrot.lane.b32.xlu1 %v2968_v0, %s2362_s4  ;;  %v1544_v0 = vld.sshfl [vmem:[#allocation1 + $0x10] sm:$0xff pattern:$0x73625140] }
 0x263   : > { %1462 = vperm.xlu2 %2071, %v2779_v5   ;;  %1566 = vst [vmem:[#allocation1] ss:$4 sm:$0xff] %v1560_v33 }
 0x264   : > { %v1193_v4 = vpop.permute.xlu1 %1192 }
 0x265   : > { %v1199_v60 = vsel %vm1198_vm13, %v1193_v4, %v2978_v46  ;;  %v3010_v3 = vpop.permute.xlu2 %1273 }
 0x266   : > { %v1203_v50 = vmul.f32 %v1199_v60, %v1185_v58 }
 0x268   : > { %v1205_v8 = vadd.f32 %v1203_v50, %v1180_v62  ;;  %2076 = vset.pattern.permute.xlu0 %v2373_v24 }
 0x26a   : > { %1474 = vrot.lane.b32.xlu1 %v1469_v2, %s2363_s7  ;;  %v1568_v54 = vld.sshfl [vmem:[#allocation1 + $0x8] sm:$0xff pattern:$0x73625140]  ;;  %v1569_v56 = vld.sshfl [vmem:[#allocation1 + $0x10] sm:$0xff pattern:$0x73625140] }
 0x26b   : > { %1499 = vrot.lane.b32.xlu2 %v1494_v37, %s2370_s29 }
 0x26c   : > { %v1197_v11 = vpop.permute.xlu1 %1196  ;;  %2073 = vset.pattern.permute.xlu2 %v2371_v51 }
 0x26d   : > { %v1200_v18 = vsel %vm1198_vm13, %v2978_v46, %v1197_v11  ;;  %v1286_v61 = vpop.permute.xlu2 %1285  ;;  %v1567_v46 = vld.sshfl [vmem:[#allocation1] sm:$0xff pattern:$0x73625140]  ;;  %vm1476_vm13 = vcmask 236544  }
 0x26e   : > { %v1204_v23 = vmul.f32 %v1200_v18, %v1185_v58  ;;  %1570 = vrot.lane.b32.xlu0 %v1567_v46, %s2372_s3  ;;  %1591 = vst [vmem:[#allocation1] ss:$4 sm:$0xff] %v1585_v21 }
 0x270   : > { %v1206_v6 = vadd.f32 %v1204_v23, %v1181_v63 }
 0x272   : > { %1497 = vrot.lane.b32.xlu1 %v1493_v25, %s2370_s29 }
 0x273   : > { %1522 = vrot.lane.b32.xlu2 %v1518_v49, %s2368_s20  ;;  %v2375_v49 = vmov 41  }
 0x274   : > { %v1220_v53 = vpop.permute.xlu1 %1219 }
 0x275   : > { %v1225_v13 = vsel %vm1223_vm14, %v1220_v53, %v1222_v22  ;;  %v1224_v7 = vsel %vm1223_vm14, %v1218_v9, %v1220_v53  ;;  %v1309_v16 = vpop.permute.xlu2 %1308  ;;  %v1594_v57 = vld.sshfl [vmem:[#allocation1 + $0x10] sm:$0xff pattern:$0x73625140]  ;;  %v1593_v11 = vld.sshfl [vmem:[#allocation1 + $0x8] sm:$0xff pattern:$0x73625140] }
 0x276   : > { %v1229_v2 = vmul.f32 %v1225_v13, %v2987_v30  ;;  %v1228_v31 = vmul.f32 %v1224_v7, %v2987_v30  ;;  %v1249_v30 = vpop.permute.xlu0 %1248  ;;  %1587 = vperm.xlu0 %2076, %v2779_v5   ;;  %v1592_v9 = vld.sshfl [vmem:[#allocation1] sm:$0xff pattern:$0x73625140]  ;;  %vm1501_vm14 = vcmask 105472  }
 0x278   : > { %v1231_v1 = vadd.f32 %v1229_v2, %v1206_v6  ;;  %v1230_v29 = vadd.f32 %v1228_v31, %v1205_v8 }
 0x27a   : > { %v1233_v37 = vmul.f32 %v1801_v26, %v1231_v1  ;;  %v1232_v19 = vmul.f32 %v1800_v32, %v1230_v29  ;;  %1495 = vrot.lane.b32.xlu1 %v2992_v38, %s2370_s29 }
 0x27b   : > { %1512 = vperm.xlu2 %2073, %v2779_v5  }
 0x27c   : > { %v3032_v25 = vadd.f32 %v1232_v19, %v2865_v36  ;;  %v1257_v42 = vpop.permute.xlu1 %1256  ;;  %v3035_v22 = vadd.f32 %v1233_v37, %v2863_v52 }
 0x27d   : > { %v1263_v40 = vsel %vm1262_vm3, %v1257_v42, %v2998_v45  ;;  %v1324_v10 = vpop.permute.xlu2 %1323 }
 0x27e   : > { %v1267_v34 = vmul.f32 %v1263_v40, %v1249_v30  ;;  %v1282_v47 = vpop.permute.xlu0 %1281 }
 0x282   : > { %1524 = vrot.lane.b32.xlu1 %v3003_v35, %s2368_s20 }
 0x283   : > { %1549 = vrot.lane.b32.xlu2 %v1544_v0, %s2374_s6 }
 0x284   : > { %v1261_v36 = vpop.permute.xlu1 %1260  ;;  %2075 = vset.pattern.permute.xlu2 %v2375_v49 }
 0x285   : > { %v1264_v38 = vsel %vm1262_vm3, %v2998_v45, %v1261_v36  ;;  %v1336_v27 = vpop.permute.xlu2 %1335  ;;  %vm1576_vm3 = vcmask 760832  }
 0x286   : > { %v1268_v52 = vmul.f32 %v1264_v38, %v1249_v30  ;;  %v1299_v45 = vpop.permute.xlu0 %1298 }
 0x28a   : > { %1547 = vrot.lane.b32.xlu1 %v1543_v12, %s2374_s6 }
 0x28b   : > { %1572 = vrot.lane.b32.xlu2 %v1568_v54, %s2372_s3 }
 0x28c   : > { %v1284_v55 = vpop.permute.xlu1 %1283 }
 0x28d   : > { %v1289_v39 = vsel %vm1287_vm4, %v1284_v55, %v1286_v61  ;;  %v1288_v44 = vsel %vm1287_vm4, %v1282_v47, %v1284_v55  ;;  %v1359_v58 = vpop.permute.xlu2 %1358  ;;  %vm1601_vm4 = vcmask 629760  }
 0x28e   : > { %v1293_v59 = vmul.f32 %v1289_v39, %v3010_v3  ;;  %v1292_v28 = vmul.f32 %v1288_v44, %v3010_v3 }
 0x290   : > { %v1295_v35 = vadd.f32 %v1293_v59, %v1268_v52  ;;  %v1294_v63 = vadd.f32 %v1292_v28, %v1267_v34 }
 0x292   : > { %1545 = vrot.lane.b32.xlu1 %v3015_v15, %s2374_s6  ;;  %v1332_v15 = vpop.permute.xlu0 %1331 }
 0x293   : > { %1562 = vperm.xlu2 %2075, %v2779_v5  }
 0x294   : > { %v1307_v62 = vpop.permute.xlu1 %1306 }
 0x295   : > { %v1313_v4 = vsel %vm1312_vm5, %v1307_v62, %v1309_v16  ;;  %v1374_v0 = vpop.permute.xlu2 %1373 }
 0x296   : > { %v1317_v60 = vmul.f32 %v1313_v4, %v1299_v45 }
 0x298   : > { %v1319_v50 = vadd.f32 %v1317_v60, %v1294_v63 }
 0x29a   : > { %1574 = vrot.lane.b32.xlu1 %v1569_v56, %s2372_s3  ;;  %v1349_v51 = vpop.permute.xlu0 %1348 }
 0x29b   : > { %1599 = vrot.lane.b32.xlu2 %v1594_v57, %s2376_s21 }
 0x29c   : > { %v1311_v8 = vpop.permute.xlu1 %1310 }
 0x29d   : > { %v1314_v3 = vsel %vm1312_vm5, %v1309_v16, %v1311_v8  ;;  %v1386_v7 = vpop.permute.xlu2 %1385  ;;  %vm1428_vm5 = vcmp.lt.s32.totalorder %v2833_v17, 13 }
 0x29e   : > { %v1318_v33 = vmul.f32 %v1314_v3, %v1299_v45 }
 0x2a0   : > { %v1320_v12 = vadd.f32 %v1318_v33, %v1295_v35  ;;  %v1803_v35 = vsel %vm1239_vm11, 1.0, %v2280_v48 }
 0x2a2   : > { %1597 = vrot.lane.b32.xlu1 %v1593_v11, %s2376_s21  ;;  %v1382_v29 = vpop.permute.xlu0 %1381 }
 0x2a4   : > { %v1334_v5 = vpop.permute.xlu1 %1333 }
 0x2a5   : > { %v1339_v18 = vsel %vm1337_vm6, %v1334_v5, %v1336_v27  ;;  %v1338_v61 = vsel %vm1337_vm6, %v1332_v15, %v1334_v5  ;;  %v1409_v16 = vpop.permute.xlu2 %1408  ;;  %v1802_v27 = vsel %vm1238_vm9, 1.0, %v2280_v48  ;;  %vm1427_vm6 = vcmp.lt.s32.totalorder %v2838_v20, 13 }
 0x2a6   : > { %v1343_v23 = vmul.f32 %v1339_v18, %v1324_v10  ;;  %v1342_v6 = vmul.f32 %v1338_v61, %v1324_v10 }
 0x2a8   : > { %v1345_v53 = vadd.f32 %v1343_v23, %v1320_v12  ;;  %v1344_v13 = vadd.f32 %v1342_v6, %v1319_v50 }
 0x2aa   : > { %1595 = vrot.lane.b32.xlu1 %v1592_v9, %s2376_s21  ;;  %v1399_v36 = vpop.permute.xlu0 %1398 }
 0x2ac   : > { %v1357_v46 = vpop.permute.xlu1 %1356 }
 0x2ad   : > { %v1363_v21 = vsel %vm1362_vm7, %v1357_v46, %v1359_v58  ;;  %v3050_v37 = vpop.permute.xlu2 %1437 }
 0x2ae   : > { %v1367_v2 = vmul.f32 %v1363_v21, %v1349_v51 }
 0x2b0   : > { %v1369_v31 = vadd.f32 %v1367_v2, %v1344_v13 }
 0x2b4   : > { %v1361_v54 = vpop.permute.xlu1 %1360 }
 0x2b5   : > { %v1364_v26 = vsel %vm1362_vm7, %v1359_v58, %v1361_v54  ;;  %v1450_v47 = vpop.permute.xlu2 %1449  ;;  %v1446_v58 = vpop.permute.xlu0 %1445 }
 0x2b6   : > { %v1368_v32 = vmul.f32 %v1364_v26, %v1349_v51 }
 0x2b8   : > { %v1370_v1 = vadd.f32 %v1368_v32, %v1345_v53 }
 0x2bc   : > { %v1384_v56 = vpop.permute.xlu1 %1383 }
 0x2bd   : > { %v1388_v19 = vsel %vm1387_vm8, %v1382_v29, %v1384_v56  ;;  %v1389_v30 = vsel %vm1387_vm8, %v1384_v56, %v1386_v7  ;;  %v1463_v45 = vpop.permute.xlu2 %1462  ;;  %v1473_v8 = vpop.permute.xlu0 %1472 }
 0x2be   : > { %v1392_v42 = vmul.f32 %v1388_v19, %v1374_v0  ;;  %v1393_v40 = vmul.f32 %v1389_v30, %v1374_v0 }
 0x2c0   : > { %v1394_v34 = vadd.f32 %v1392_v42, %v1369_v31  ;;  %v1395_v10 = vadd.f32 %v1393_v40, %v1370_v1 }
 0x2c4   : > { %v1407_v24 = vpop.permute.xlu1 %1406 }
 0x2c5   : > { %v1413_v38 = vsel %vm1412_vm10, %v1407_v24, %v1409_v16  ;;  %v1500_v50 = vpop.permute.xlu2 %1499  ;;  %v1471_v33 = vpop.permute.xlu0 %1470 }
 0x2c6   : > { %v1417_v52 = vmul.f32 %v1413_v38, %v1399_v36  ;;  %v1477_v7 = vsel %vm1476_vm13, %v1471_v33, %v1473_v8 }
 0x2c7   : > { %v1481_v32 = vmul.f32 %v1477_v7, %v1463_v45 }
 0x2c8   : > { %v1419_v55 = vadd.f32 %v1417_v52, %v1394_v34 }
 0x2ca   : > { %v1421_v39 = vmul.f32 %v1802_v27, %v1419_v55 }
 0x2cc   : > { %v3055_v44 = vadd.f32 %v1421_v39, %v2936_v14  ;;  %v1411_v49 = vpop.permute.xlu1 %1410 }
 0x2cd   : > { %v1414_v59 = vsel %vm1412_vm10, %v1409_v16, %v1411_v49  ;;  %v1523_v14 = vpop.permute.xlu2 %1522  ;;  %v1488_v12 = vpop.permute.xlu0 %1487 }
 0x2ce   : > { %v1418_v28 = vmul.f32 %v1414_v59, %v1399_v36 }
 0x2d0   : > { %v1420_v63 = vadd.f32 %v1418_v28, %v1395_v10 }
 0x2d2   : > { %v1422_v62 = vmul.f32 %v1803_v35, %v1420_v63 }
 0x2d4   : > { %v3060_v4 = vadd.f32 %v1422_v62, %v2947_v43  ;;  %v1448_v60 = vpop.permute.xlu1 %1447 }
 0x2d5   : > { %v1513_v11 = vpop.permute.xlu2 %1512  ;;  %v1521_v18 = vpop.permute.xlu0 %1520  ;;  %v1453_v53 = vsel %vm1451_vm12, %v1448_v60, %v1450_v47  ;;  %v1452_v21 = vsel %vm1451_vm12, %v1446_v58, %v1448_v60  ;;  %v1805_v58 = vsel %vm1428_vm5, 1.0, %v2280_v48 }
 0x2d6   : > { %v1457_v16 = vmul.f32 %v1453_v53, %v3050_v37  ;;  %v1456_v56 = vmul.f32 %v1452_v21, %v3050_v37  ;;  %v1527_v24 = vsel %vm1526_vm15, %v1521_v18, %v1523_v14 }
 0x2d7   : > { %v1531_v37 = vmul.f32 %v1527_v24, %v1513_v11 }
 0x2d8   : > { %v1483_v36 = vadd.f32 %v1481_v32, %v1456_v56 }
 0x2dc   : > { %v1475_v57 = vpop.permute.xlu1 %1474 }
 0x2dd   : > { %v1550_v5 = vpop.permute.xlu2 %1549  ;;  %v1538_v6 = vpop.permute.xlu0 %1537  ;;  %v1478_v43 = vsel %vm1476_vm13, %v1473_v8, %v1475_v57 }
 0x2de   : > { %v1482_v51 = vmul.f32 %v1478_v43, %v1463_v45 }
 0x2e0   : > { %v1484_v19 = vadd.f32 %v1482_v51, %v1457_v16 }
 0x2e4   : > { %v1498_v3 = vpop.permute.xlu1 %1497 }
 0x2e5   : > { %v1573_v23 = vpop.permute.xlu2 %1572  ;;  %v1503_v13 = vsel %vm1501_vm14, %v1498_v3, %v1500_v50  ;;  %v1571_v31 = vpop.permute.xlu0 %1570 }
 0x2e6   : > { %v1507_v54 = vmul.f32 %v1503_v13, %v1488_v12  ;;  %v1577_v62 = vsel %vm1576_vm3, %v1571_v31, %v1573_v23 }
 0x2e8   : > { %v1509_v40 = vadd.f32 %v1507_v54, %v1484_v19 }
 0x2ec   : > { %v1496_v0 = vpop.permute.xlu1 %1495 }
 0x2ed   : > { %v1563_v46 = vpop.permute.xlu2 %1562  ;;  %v1502_v1 = vsel %vm1501_vm14, %v1496_v0, %v1498_v3  ;;  %v1588_v55 = vpop.permute.xlu0 %1587 }
 0x2ee   : > { %v1506_v34 = vmul.f32 %v1502_v1, %v1488_v12  ;;  %v1581_v8 = vmul.f32 %v1577_v62, %v1563_v46 }
 0x2f0   : > { %v1508_v39 = vadd.f32 %v1506_v34, %v1483_v36 }
 0x2f2   : > { %v1533_v60 = vadd.f32 %v1531_v37, %v1508_v39 }
 0x2f4   : > { %v1525_v15 = vpop.permute.xlu1 %1524 }
 0x2f5   : > { %v1528_v2 = vsel %vm1526_vm15, %v1523_v14, %v1525_v15  ;;  %v1600_v47 = vpop.permute.xlu2 %1599  ;;  %v1804_v15 = vsel %vm1427_vm6, 1.0, %v2280_v48 }
 0x2f6   : > { %v1532_v30 = vmul.f32 %v1528_v2, %v1513_v11 }
 0x2f8   : > { %v1534_v38 = vadd.f32 %v1532_v30, %v1509_v40 }
 0x2fc   : > { %v1548_v61 = vpop.permute.xlu1 %1547 }
 0x2fd   : > { %v1553_v29 = vsel %vm1551_vm0, %v1548_v61, %v1550_v5 }
 0x2fe   : > { %v1557_v10 = vmul.f32 %v1553_v29, %v1538_v6 }
 0x300   : > { %v1559_v49 = vadd.f32 %v1557_v10, %v1534_v38 }
 0x304   : > { %v1546_v9 = vpop.permute.xlu1 %1545 }
 0x305   : > { %v1552_v27 = vsel %vm1551_vm0, %v1546_v9, %v1548_v61 }
 0x306   : > { %v1556_v35 = vmul.f32 %v1552_v27, %v1538_v6 }
 0x308   : > { %v1558_v57 = vadd.f32 %v1556_v35, %v1533_v60 }
 0x30a   : > { %v1583_v0 = vadd.f32 %v1581_v8, %v1558_v57 }
 0x30c   : > { %v1575_v26 = vpop.permute.xlu1 %1574 }
 0x30d   : > { %v1578_v42 = vsel %vm1576_vm3, %v1573_v23, %v1575_v26 }
 0x30e   : > { %v1582_v52 = vmul.f32 %v1578_v42, %v1563_v46 }
 0x310   : > { %v1584_v63 = vadd.f32 %v1582_v52, %v1559_v49 }
 0x314   : > { %v1598_v59 = vpop.permute.xlu1 %1597 }
 0x315   : > { %v1603_v28 = vsel %vm1601_vm4, %v1598_v59, %v1600_v47 }
 0x316   : > { %v1607_v45 = vmul.f32 %v1603_v28, %v1588_v55 }
 0x318   : > { %v1609_v50 = vadd.f32 %v1607_v45, %v1584_v63 }
 0x31a   : > { %v1611_v14 = vmul.f32 %v1805_v58, %v1609_v50 }
 0x31c   : > { %v1613_v3 = vadd.f32 %v1611_v14, %v3035_v22  ;;  %v1596_v33 = vpop.permute.xlu1 %1595 }
 0x31d   : > { %v1602_v17 = vsel %vm1601_vm4, %v1596_v33, %v1598_v59 }
 0x31e   : > { %v1615_v11 = vadd.f32 %v1613_v3, %v3060_v4  ;;  %v1606_v12 = vmul.f32 %v1602_v17, %v1588_v55 }
 0x320   : > { %v1619_v5 = vrot.slane %v1615_v11, 1  ;;  %v1608_v18 = vadd.f32 %v1606_v12, %v1583_v0 }
 0x322   : > { %v1623_v61 = vadd.f32 %v1619_v5, %v1615_v11  ;;  %v1610_v23 = vmul.f32 %v1804_v15, %v1608_v18 }
 0x324   : > { %v1807_v6 = vmul.f32 -1.442695, %v1623_v61  ;;  %v1612_v9 = vadd.f32 %v1610_v23, %v3032_v25 }
 0x326   : > { %2077 = vpow2.f32 %v1807_v6  ;;  %v1614_v22 = vadd.f32 %v1612_v9, %v3055_v44 }
 0x328   : > { %v1618_v20 = vrot.slane %v1614_v22, 1 }
 0x32a   : > { %v1622_v43 = vadd.f32 %v1618_v20, %v1614_v22 }
 0x32c   : > { %v2078_v53 = vpop.eup %2077  ;;  %v1806_v13 = vmul.f32 -1.442695, %v1622_v43 }
 0x32d   : > { %v1631_v7 = vadd.f32 1.0, %v2078_v53 }
 0x32e   : > { %2079 = vpow2.f32 %v1806_v13 }
 0x32f   : > { %2081 = vrcp.f32 %v1631_v7  ;;  %v1658_v16 = vand.u32 2147483648, %v1631_v7  ;;  %vm1652_vm8 = vweird.f32 %v1631_v7  ;;  %v1656_v44 = vand.u32 2147483647, %v1631_v7 }
 0x331   : > { %v1659_v1 = vor.u32 1.1754944e-38, %v1658_v16  ;;  %vm1657_vm9 = vcmp.eq.f32.partialorder %v1656_v44, 8.507059e+37 }
 0x334   : > { %v2080_v4 = vpop.eup %2079 }
 0x335   : > { %v2082_v51 = vpop.eup %2081  ;;  %v1630_v48 = vadd.f32 1.0, %v2080_v4 }
 0x336   : > { %v1648_v46 = vmul.f32 %v2082_v51, %v1631_v7  ;;  %vm1653_vm7 = vweird.f32 %v2082_v51 }
 0x337   : > { %2083 = vrcp.f32 %v1630_v48  ;;  %vm1654_vm10 = vmor %vm1652_vm8, %vm1653_vm7  ;;  %v1643_v29 = vand.u32 2147483648, %v1630_v48  ;;  %v1641_v19 = vand.u32 2147483647, %v1630_v48  ;;  %vm1637_vm12 = vweird.f32 %v1630_v48 }
 0x338   : > { %v1649_v21 = vsub.f32 1.0, %v1648_v46 }
 0x339   : > { %v1644_v40 = vor.u32 1.1754944e-38, %v1643_v29  ;;  %vm1642_vm14 = vcmp.eq.f32.partialorder %v1641_v19, 8.507059e+37 }
 0x33a   : > { %v1650_v2 = vmul.f32 %v2082_v51, %v1649_v21 }
 0x33c   : > { %v1651_v31 = vadd.f32 %v2082_v51, %v1650_v2 }
 0x33d   : > { %v2084_v25 = vpop.eup %2083 }
 0x33e   : > { %v1633_v54 = vmul.f32 %v2084_v25, %v1630_v48  ;;  %v1655_v26 = vsel %vm1654_vm10, %v2082_v51, %v1651_v31  ;;  %vm1638_vm11 = vweird.f32 %v2084_v25 }
 0x33f   : > { %v1660_v30 = vsel %vm1657_vm9, %v1659_v1, %v1655_v26  ;;  %vm1639_vm13 = vmor %vm1637_vm12, %vm1638_vm11 }
 0x340   : > { %v1634_v32 = vsub.f32 1.0, %v1633_v54  ;;  %v1664_v34 = vrot.slane %v1660_v30, 7 }
 0x342   : > { %v1635_v56 = vmul.f32 %v2084_v25, %v1634_v32 }
 0x344   : > { %v1636_v42 = vadd.f32 %v2084_v25, %v1635_v56 }
 0x346   : > { %v1640_v10 = vsel %vm1639_vm13, %v2084_v25, %v1636_v42 }
 0x347   : > { %v1645_v24 = vsel %vm1642_vm14, %v1644_v40, %v1640_v10 }
 0x348   : > { %v1665_v36 = vsel %vm229_vm1, %v1645_v24, %v1664_v34 }
 0x349   : > { %1667 = vst.msk [vmem:[%s195_s27] sm:$0x3] %vm2548_vm2, %v1665_v36 }
 0x34a PF: > { %s1809_s30 = sshll.u32 %s2260_s16, 1  ;;  %s3175_s24 = sld [smem:[#allocation21_spill]] }
 0x34b   : > { %s1681_s15 = sshll.u32 %s195_s27, 4  ;;  %s1669_s26 = scalar_lea.sflag [#allocation7], %s193_s2  ;;  %s1682_s15 = int_to_ptr.vmem [resolvable:$true] %s1681_s15 }
 0x350   : > { %s1679_s19 = scalar_lea.hbm %s3175_s24, %s1809_s30  ;;  %s2166_s8 = scalar_lea.hbm %s3175_s24, 4 }
 0x351   : > { %s1683_s23 = sshll.u32 %s1679_s19, 4  ;;  %s1684_s23 = int_to_ptr.hbm [resolvable:$true] %s1683_s23 }
 0x352   : > { %s2160_s28 = sshra.s32 %s1684_s23, 4  ;;  %s2161_s28 = int_to_ptr.hbm [resolvable:$true] %s2160_s28 }
 0x353   : > { %s2162_s4 = scalar_lea.hbm %s2161_s28, 2  ;;  %p2167_p2 = scmp.lt.s32.totalorder %s2161_s28, %s3175_s24 }
 0x354   : > { %p2163_p6 = scmp.ne.s32.totalorder %s2161_s28, %s2162_s4  ;;  %p2168_p5 = scmp.lt.s32.totalorder %s2166_s8, %s2162_s4 }
 0x356   : > { %p2164_p0 = pnand %p2163_p6, %p2471_p10  ;;  %p2169_p7 = por %p2168_p5, %p2167_p2 }
 0x358   : > { %p2165_p1 = pneg %p2164_p0 }
 0x35a   : > { %p2170_p8 = pnand %p2169_p7, %p2165_p1 }
 0x35c   : > { %2173 = shalt.err (!%p2170_p8)
}
 0x35d   : > { %1819 = dma.vmem_to_hbm [thread:$0]  (%p2471_p10), %s1682_s15, 32, %s1684_s23, %s1669_s26  }
 0x35e PF: > { %s3176_s2 = sld [smem:[#allocation16_spill]] }
 0x35f   : > { %s3177_s9 = sld [smem:[#allocation14_spill]] }
 0x364   : > { %p1836_p4 = scmp.ge.s32.totalorder %s3176_s2, 2 }
 0x365   : > { %s1695_s3 = sand.u32 1, %s3177_s9  }
 0x366   : > { %p1830_p9 = pnand %p1836_p4, %p2476_p12  ;;  %s1696_s6 = scalar_lea.sflag [#allocation7], %s1695_s3 }
 0x368   : > { %p1831_p11 = pneg %p1830_p9 }
 0x36a   : > { %2227 = dma.done.wait (%p1831_p11), %s1696_s6, 32  }
 0x36b   : > { %2229 = vsyncadd (%p1831_p11), %s1696_s6, 4294967264  ;;  %s19_s19 = sadd.s32 1, %s3176_s2   ;;  %s3179_s15 = sld [smem:[#allocation15_spill]] }
 0x36c   : > { %p16_p13 = scmp.ge.s32.totalorder %s19_s19, 6   ;;  %s3180_s21 = sld [smem:[#allocation19_spill]] }
 0x36d   : > { %s3181_s25 = smov %s3196_s12  ;;  %s3182_s9 = smov %s2236_s10 }
 0x36e   : > { %s3183_s10 = smov %s2240_s11  ;;  %s3184_s11 = smov %s2519_s17 }
 0x36f   : > { %s3185_s12 = smov %s2248_s13  ;;  %s3186_s13 = smov %s2252_s14 }
 0x370   : > { %s3187_s14 = smov %s2524_s5  ;;  %s3188_s16 = smov %s2268_s18 }
 0x371   : > { %s3190_s18 = smov %s3181_s25  ;;  %18 = sbr.rel (!%p16_p13) target bundleno = 13 (0xd), region = 87 }
 0x372   : > { %s3189_s17 = smov %s3180_s21 }
 0x376   :  { %1702 = vsyncpa [#allocation6], 1 }
 0x377   :  { %1704 = vsyncpa [#allocation6 + $0x1], 1 }
 0x378   :  { %1705 = vsyncpa [#allocation9], 1 }
 0x379   :  { %1706 = vsyncpa [#allocation7], 1 }
 0x37a   :  { %1708 = vsyncpa [#allocation7 + $0x1], 1 }

</bundles_post_ra>
